<compile_context>
chip_gen: v5e
topology: v5e:2x2
jax: 0.10.0
libtpu: 0.0.40
codegen_flags: <defaults>
</compile_context>

<pallas_src>
import jax
import jax.numpy as jnp
from jax.experimental import pallas as pl
from jax.experimental.pallas import tpu as pltpu

# ----- hyper-parameters consistent with the PyTorch module ------------------
IMG = 16          # img_size
PATCH = 8         # patch_size
CIN = 3           # in_channels
EMBED = 32        # embedding_dim
HEADS = 4         # num_heads
DHEAD = EMBED // HEADS            # dim_head = 8
NBF = 16          # performer nb_features
MLP = 64          # mlp_size
LAYERS = 2        # num_transformer_layers
CLASSES = 10      # num_classes
NPATCH = (IMG // PATCH) ** 2      # 4
SEQ = NPATCH + 1                  # 5 (cls token + patches)
KDIM = CIN * PATCH * PATCH        # 192 (flattened conv reduction)
OUT_PAD = 128                     # lane-dense classifier output width
FEAT_EPS = 1e-3                   # performer kernel_epsilon


# ---------------------------------------------------------------------------
# in-kernel helpers
# ---------------------------------------------------------------------------
def _layernorm(x, g, b, eps=1e-5):
    mu = jnp.mean(x, axis=-1, keepdims=True)
    var = jnp.mean(jnp.square(x - mu), axis=-1, keepdims=True)
    return (x - mu) * jax.lax.rsqrt(var + eps) * g + b


def _gelu(x):
    # TODO(synk): PyTorch nn.GELU() defaults to the exact erf form; the tanh
    # approximation is used since erf has no guaranteed Mosaic lowering.
    c = 0.7978845608028654  # sqrt(2/pi)
    return 0.5 * x * (1.0 + jnp.tanh(c * (x + 0.044715 * x * x * x)))


# ---------------------------------------------------------------------------
# the fused per-batch kernel
# ---------------------------------------------------------------------------
def vit_kernel(patches_ref, convw_ref, base_ref, wqk_ref, wvo_ref,
               w1_ref, w2_ref, lvec_ref, head_ref, out_ref):
    f32 = jnp.float32

    # ---- patch embedding: Conv2d(kernel==stride==patch) as a matmul --------
    # (conv bias is pre-folded into base rows 1..SEQ-1)
    pe = jnp.dot(patches_ref[0], convw_ref[...],
                 preferred_element_type=f32)                       # (Np, E)
    base = base_ref[...]                                           # (SEQ, E)
    # token assembly: row 0 = cls + pos[0]; rows 1.. = patch emb + pos (+ bias)
    # embedding_dropout: identity (eval).
    x = jnp.concatenate([base[0:1, :], pe + base[1:, :]], axis=0)  # (SEQ, E)

    for l in range(LAYERS):                     # static unroll, VMEM-resident
        # --- Performer SelfAttention (generalized / ReLU kernel) ------------
        wq3 = wqk_ref[2 * l]          # (H, E, NBF) = Wq_head @ (norm * projT)
        wk3 = wqk_ref[2 * l + 1]      # (H, E, NBF)
        wv3 = wvo_ref[2 * l]          # (H, E, DHEAD)
        wo3 = wvo_ref[2 * l + 1]      # (H, E, DHEAD) = Wo_head^T

        x3 = jnp.broadcast_to(x, (HEADS, SEQ, EMBED))
        qp = jnp.maximum(jnp.einsum('hse,hem->hsm', x3, wq3,
                                    preferred_element_type=f32), 0.0) + FEAT_EPS
        kp = jnp.maximum(jnp.einsum('hse,hem->hsm', x3, wk3,
                                    preferred_element_type=f32), 0.0) + FEAT_EPS
        v3 = jnp.einsum('hse,hed->hsd', x3, wv3, preferred_element_type=f32)

        # explicit-score association order: algebraically identical to
        # Performer's q'(k'^T v) / q'(k'^T 1) for non-causal attention.
        s = jnp.einsum('hsm,htm->hst', qp, kp,
                       preferred_element_type=f32)                 # (H, S, S)
        d_inv = pl.reciprocal(jnp.sum(s, axis=-1, keepdims=True), approx=True)
        o3 = d_inv * jnp.einsum('hst,htd->hsd', s, v3,
                                preferred_element_type=f32)        # (H, S, Dh)
        # per-head output-projection blocks summed over heads == concat @ Wo
        attn = jnp.sum(jnp.einsum('hsd,hed->hse', o3, wo3,
                                  preferred_element_type=f32), axis=0)  # (S, E)
        # to_out bias + residual; attention dropout: identity (eval)
        x = x + attn + lvec_ref[l, 0:1, :EMBED]

        # --- MLPBlock: LayerNorm -> Linear -> GELU -> Linear (+ residual) ---
        xn = _layernorm(x, lvec_ref[l, 1:2, :EMBED], lvec_ref[l, 2:3, :EMBED])
        h1 = _gelu(jnp.dot(xn, w1_ref[l], preferred_element_type=f32)
                   + lvec_ref[l, 3:4, :MLP])
        x = x + jnp.dot(h1, w2_ref[l], preferred_element_type=f32) \
              + lvec_ref[l, 4:5, :EMBED]

    # ---- classifier head on the cls token (row 0), lane-dense output -------
    cls = x[0:1, :]                                                # (1, E)
    cn = _layernorm(cls, head_ref[EMBED:EMBED + 1, :EMBED],
                    head_ref[EMBED + 1:EMBED + 2, :EMBED])
    out_ref[0] = (jnp.dot(cn, head_ref[0:EMBED, :], preferred_element_type=f32)
                  + head_ref[EMBED + 2:EMBED + 3, :])              # (1, 128)


# ---------------------------------------------------------------------------
# wrapper: weight packing (trace-time) + pallas_call with a batch grid
# ---------------------------------------------------------------------------
def vit_forward(x_nchw, params):
    B = x_nchw.shape[0]
    hp = IMG // PATCH
    # (B,C,H,W) -> (B,Hp,Wp,C,P,P) -> (B, Np, C*P*P): conv reduction flattened
    # in (c, ph, pw) order to match the Conv2d weight layout.
    p = x_nchw.reshape(B, CIN, hp, PATCH, hp, PATCH)
    p = p.transpose(0, 2, 4, 1, 3, 5).reshape(B, NPATCH, KDIM)

    convw = params['conv_w'].reshape(EMBED, KDIM).T                # (K, E)
    convb = params['conv_b'].reshape(1, EMBED)
    pos = params['pos'].reshape(SEQ, EMBED)
    cls = params['cls'].reshape(1, EMBED)
    # base row 0 = cls + pos[0]; rows 1.. = pos + conv bias (bias folded here)
    base = jnp.concatenate([pos[0:1] + cls, pos[1:] + convb], axis=0)  # (SEQ,E)

    norm = DHEAD ** -0.25                                          # data_normalizer

    def head_split_cols(w):            # (E, E) -> (H, E, DHEAD)
        return jnp.stack([w[:, h * DHEAD:(h + 1) * DHEAD]
                          for h in range(HEADS)], axis=0)

    wqk, wvo, w1, w2, lvec = [], [], [], [], []
    for lp in params['layers']:
        projt = lp['projt'] * norm                                 # (DHEAD, NBF)
        # fold the (shared) Performer feature projection into per-head q/k
        # weights: q'_h = relu(x @ (Wq_h @ (norm * projT))) + eps
        wqk.append(jnp.einsum('hed,dm->hem', head_split_cols(lp['wq']), projt))
        wqk.append(jnp.einsum('hed,dm->hem', head_split_cols(lp['wk']), projt))
        wvo.append(head_split_cols(lp['wv']))                      # (H, E, Dh)
        wvo.append(jnp.stack([lp['wo'][h * DHEAD:(h + 1) * DHEAD, :].T
                              for h in range(HEADS)], axis=0))     # Wo_h^T
        w1.append(lp['w1'])
        w2.append(lp['w2'])
        vec = jnp.zeros((8, 128), jnp.float32)
        vec = vec.at[0, :EMBED].set(lp['bo'].reshape(EMBED))
        vec = vec.at[1, :EMBED].set(lp['ln_g'].reshape(EMBED))
        vec = vec.at[2, :EMBED].set(lp['ln_b'].reshape(EMBED))
        vec = vec.at[3, :MLP].set(lp['b1'].reshape(MLP))
        vec = vec.at[4, :EMBED].set(lp['b2'].reshape(EMBED))
        lvec.append(vec)

    wqk = jnp.stack(wqk, axis=0)       # (2L, H, E, NBF)
    wvo = jnp.stack(wvo, axis=0)       # (2L, H, E, DHEAD)
    w1 = jnp.stack(w1, axis=0)         # (L, E, MLP)
    w2 = jnp.stack(w2, axis=0)         # (L, MLP, E)
    lvec = jnp.stack(lvec, axis=0)     # (L, 8, 128)

    # classifier slab: rows 0..E-1 = head_w (lane-padded), E = ln_g,
    # E+1 = ln_b, E+2 = head_b (lane-padded)
    head = jnp.zeros((EMBED + 8, OUT_PAD), jnp.float32)
    head = head.at[0:EMBED, :CLASSES].set(params['head_w'])
    head = head.at[EMBED, :EMBED].set(params['head_ln_g'].reshape(EMBED))
    head = head.at[EMBED + 1, :EMBED].set(params['head_ln_b'].reshape(EMBED))
    head = head.at[EMBED + 2, :CLASSES].set(params['head_b'].reshape(CLASSES))

    vmem = pltpu.MemorySpace.VMEM

    def resident(arr):     # whole-array block, DMA'd once, stays VMEM-resident
        ndim = arr.ndim
        return pl.BlockSpec(arr.shape, lambda b: (0,) * ndim, memory_space=vmem)

    out = pl.pallas_call(
        vit_kernel,
        out_shape=jax.ShapeDtypeStruct((B, 1, OUT_PAD), jnp.float32),
        grid=(B,),
        in_specs=[
            pl.BlockSpec((1, NPATCH, KDIM), lambda b: (b, 0, 0),
                         memory_space=vmem),
            resident(convw), resident(base), resident(wqk), resident(wvo),
            resident(w1), resident(w2), resident(lvec), resident(head),
        ],
        out_specs=pl.BlockSpec((1, 1, OUT_PAD), lambda b: (b, 0, 0),
                               memory_space=vmem),
        compiler_params=pltpu.CompilerParams(
            dimension_semantics=("parallel",)),
    )(p, convw, base, wqk, wvo, w1, w2, lvec, head)

    return out[:, 0, :CLASSES]


# ---------------------------------------------------------------------------
# deterministic parameter init (synthetic; matches module shapes)
# ---------------------------------------------------------------------------
def init_params(key):
    keys = iter(jax.random.split(key, 128))

    def nrm(shape, scale=0.02):
        return scale * jax.random.normal(next(keys), shape, jnp.float32)

    params = {
        'conv_w': nrm((EMBED, CIN, PATCH, PATCH)),     # Conv2d weight (E,C,P,P)
        'conv_b': nrm((EMBED,)),
        'cls': nrm((1, 1, EMBED)),
        'pos': nrm((1, SEQ, EMBED)),
        'head_ln_g': jnp.ones((1, EMBED), jnp.float32),
        'head_ln_b': jnp.zeros((1, EMBED), jnp.float32),
        'head_w': nrm((EMBED, CLASSES)),
        'head_b': jnp.zeros((1, CLASSES), jnp.float32),
        'layers': [],
    }
    for _ in range(LAYERS):
        params['layers'].append({
            'wq': nrm((EMBED, EMBED)),        # to_q/to_k/to_v (qkv_bias=False)
            'wk': nrm((EMBED, EMBED)),
            'wv': nrm((EMBED, EMBED)),
            'wo': nrm((EMBED, EMBED)),
            'bo': jnp.zeros((1, EMBED), jnp.float32),
            # TODO(synk): Performer uses a Gaussian *orthogonal* random-feature
            # matrix; a plain Gaussian projection serves as the deterministic
            # synthetic parameter here (stored pre-transposed as (Dh, M)).
            'projt': jax.random.normal(next(keys), (DHEAD, NBF), jnp.float32),
            'ln_g': jnp.ones((1, EMBED), jnp.float32),
            'ln_b': jnp.zeros((1, EMBED), jnp.float32),
            'w1': nrm((EMBED, MLP)), 'b1': jnp.zeros((1, MLP), jnp.float32),
            'w2': nrm((MLP, EMBED)), 'b2': jnp.zeros((1, EMBED), jnp.float32),
        })
    return params


if __name__ == "__main__":
    key = jax.random.PRNGKey(0)
    pkey, xkey = jax.random.split(key)
    params = init_params(pkey)
    x = jax.random.normal(xkey, (2, CIN, IMG, IMG), jnp.float32)   # NCHW input
    out = jax.jit(vit_forward)(x, params)
    out = jax.block_until_ready(out)
    assert out.shape == (2, CLASSES) and bool(jnp.all(jnp.isfinite(out)))
    print("KERNEL_OK")
</pallas_src>

<mosaic_0001>
module attributes {stable_mosaic.version = 11 : i64} {
  func.func @vit_kernel(%arg0: i32, %arg1: memref<1x4x192xf32, #tpu.memory_space<vmem>>, %arg2: memref<192x32xf32, #tpu.memory_space<vmem>>, %arg3: memref<5x32xf32, #tpu.memory_space<vmem>>, %arg4: memref<4x4x32x16xf32, #tpu.memory_space<vmem>>, %arg5: memref<4x4x32x8xf32, #tpu.memory_space<vmem>>, %arg6: memref<2x32x64xf32, #tpu.memory_space<vmem>>, %arg7: memref<2x64x32xf32, #tpu.memory_space<vmem>>, %arg8: memref<2x8x128xf32, #tpu.memory_space<vmem>>, %arg9: memref<40x128xf32, #tpu.memory_space<vmem>>, %arg10: memref<1x1x128xf32, #tpu.memory_space<vmem>>) attributes {dimension_semantics = [#tpu.dimension_semantics<parallel>], iteration_bounds = array<i64: 2>, scalar_prefetch = 0 : i64, scratch_operands = 0 : i64, tpu.core_type = #tpu.core_type<tc>, window_params = [{transform_indices = @transform_0, window_bounds = array<i64: 1, 4, 192>}, {pipeline_mode = #tpu.pipeline_mode<synchronous>, transform_indices = @transform_1, window_bounds = array<i64: 192, 32>}, {pipeline_mode = #tpu.pipeline_mode<synchronous>, transform_indices = @transform_2, window_bounds = array<i64: 5, 32>}, {pipeline_mode = #tpu.pipeline_mode<synchronous>, transform_indices = @transform_3, window_bounds = array<i64: 4, 4, 32, 16>}, {pipeline_mode = #tpu.pipeline_mode<synchronous>, transform_indices = @transform_4, window_bounds = array<i64: 4, 4, 32, 8>}, {pipeline_mode = #tpu.pipeline_mode<synchronous>, transform_indices = @transform_5, window_bounds = array<i64: 2, 32, 64>}, {pipeline_mode = #tpu.pipeline_mode<synchronous>, transform_indices = @transform_6, window_bounds = array<i64: 2, 64, 32>}, {pipeline_mode = #tpu.pipeline_mode<synchronous>, transform_indices = @transform_7, window_bounds = array<i64: 2, 8, 128>}, {pipeline_mode = #tpu.pipeline_mode<synchronous>, transform_indices = @transform_8, window_bounds = array<i64: 40, 128>}, {transform_indices = @transform_9, window_bounds = array<i64: 1, 1, 128>}]} {
    %c0 = arith.constant 0 : index
    %c0_0 = arith.constant 0 : index
    %c0_1 = arith.constant 0 : index
    %0 = vector.load %arg1[%c0, %c0_0, %c0_1] : memref<1x4x192xf32, #tpu.memory_space<vmem>>, vector<1x4x192xf32>
    %1 = vector.shape_cast %0 : vector<1x4x192xf32> to vector<4x192xf32>
    %c0_2 = arith.constant 0 : index
    %c0_3 = arith.constant 0 : index
    %2 = vector.load %arg2[%c0_2, %c0_3] : memref<192x32xf32, #tpu.memory_space<vmem>>, vector<192x32xf32>
    %cst = arith.constant dense<0.000000e+00> : vector<4x32xf32>
    %3 = tpu.matmul %1, %2, %cst {dimension_numbers = #tpu.dot_dimension_numbers<[1], [0], [0], [1], [0, 0, 1, 1], [], []>} : vector<4x192xf32>, vector<192x32xf32>, vector<4x32xf32> -> vector<4x32xf32>
    %c0_4 = arith.constant 0 : index
    %c0_5 = arith.constant 0 : index
    %4 = vector.load %arg3[%c0_4, %c0_5] : memref<5x32xf32, #tpu.memory_space<vmem>>, vector<5x32xf32>
    %5 = vector.extract_strided_slice %4 {offsets = [0, 0], sizes = [1, 32], strides = [1, 1]} : vector<5x32xf32> to vector<1x32xf32>
    %6 = vector.extract_strided_slice %4 {offsets = [1, 0], sizes = [4, 32], strides = [1, 1]} : vector<5x32xf32> to vector<4x32xf32>
    %7 = arith.addf %3, %6 : vector<4x32xf32>
    %8 = tpu.concatenate %5, %7 in 0 : vector<1x32xf32>, vector<4x32xf32> -> vector<5x32xf32>
    %c0_6 = arith.constant 0 : index
    %c0_7 = arith.constant 0 : index
    %c0_8 = arith.constant 0 : index
    %c0_9 = arith.constant 0 : index
    %9 = vector.load %arg4[%c0_6, %c0_7, %c0_8, %c0_9] : memref<4x4x32x16xf32, #tpu.memory_space<vmem>>, vector<1x4x32x16xf32>
    %10 = vector.shape_cast %9 : vector<1x4x32x16xf32> to vector<4x32x16xf32>
    %c1 = arith.constant 1 : index
    %c0_10 = arith.constant 0 : index
    %c0_11 = arith.constant 0 : index
    %c0_12 = arith.constant 0 : index
    %11 = vector.load %arg4[%c1, %c0_10, %c0_11, %c0_12] : memref<4x4x32x16xf32, #tpu.memory_space<vmem>>, vector<1x4x32x16xf32>
    %12 = vector.shape_cast %11 : vector<1x4x32x16xf32> to vector<4x32x16xf32>
    %c0_13 = arith.constant 0 : index
    %c0_14 = arith.constant 0 : index
    %c0_15 = arith.constant 0 : index
    %c0_16 = arith.constant 0 : index
    %13 = vector.load %arg5[%c0_13, %c0_14, %c0_15, %c0_16] : memref<4x4x32x8xf32, #tpu.memory_space<vmem>>, vector<1x4x32x8xf32>
    %14 = vector.shape_cast %13 : vector<1x4x32x8xf32> to vector<4x32x8xf32>
    %c1_17 = arith.constant 1 : index
    %c0_18 = arith.constant 0 : index
    %c0_19 = arith.constant 0 : index
    %c0_20 = arith.constant 0 : index
    %15 = vector.load %arg5[%c1_17, %c0_18, %c0_19, %c0_20] : memref<4x4x32x8xf32, #tpu.memory_space<vmem>>, vector<1x4x32x8xf32>
    %16 = vector.shape_cast %15 : vector<1x4x32x8xf32> to vector<4x32x8xf32>
    %17 = vector.shape_cast %8 : vector<5x32xf32> to vector<1x5x32xf32>
    %18 = vector.broadcast %17 : vector<1x5x32xf32> to vector<4x5x32xf32>
    "tpu.trace_start"() <{level = 10 : i32, message = "hse,hem->hsm"}> : () -> ()
    %cst_21 = arith.constant dense<0.000000e+00> : vector<4x5x16xf32>
    %19 = tpu.matmul %18, %10, %cst_21 {dimension_numbers = #tpu.dot_dimension_numbers<[2], [1], [1], [2], [0, 0, 0, 1, 1, 2], [0], [0]>} : vector<4x5x32xf32>, vector<4x32x16xf32>, vector<4x5x16xf32> -> vector<4x5x16xf32>
    "tpu.trace_stop"() : () -> ()
    %cst_22 = arith.constant 0.000000e+00 : f32
    %20 = vector.broadcast %cst_22 : f32 to vector<4x5x16xf32>
    %21 = arith.maximumf %19, %20 : vector<4x5x16xf32>
    %cst_23 = arith.constant 1.000000e-03 : f32
    %22 = vector.broadcast %cst_23 : f32 to vector<4x5x16xf32>
    %23 = arith.addf %21, %22 : vector<4x5x16xf32>
    "tpu.trace_start"() <{level = 10 : i32, message = "hse,hem->hsm"}> : () -> ()
    %cst_24 = arith.constant dense<0.000000e+00> : vector<4x5x16xf32>
    %24 = tpu.matmul %18, %12, %cst_24 {dimension_numbers = #tpu.dot_dimension_numbers<[2], [1], [1], [2], [0, 0, 0, 1, 1, 2], [0], [0]>} : vector<4x5x32xf32>, vector<4x32x16xf32>, vector<4x5x16xf32> -> vector<4x5x16xf32>
    "tpu.trace_stop"() : () -> ()
    %cst_25 = arith.constant 0.000000e+00 : f32
    %25 = vector.broadcast %cst_25 : f32 to vector<4x5x16xf32>
    %26 = arith.maximumf %24, %25 : vector<4x5x16xf32>
    %cst_26 = arith.constant 1.000000e-03 : f32
    %27 = vector.broadcast %cst_26 : f32 to vector<4x5x16xf32>
    %28 = arith.addf %26, %27 : vector<4x5x16xf32>
    "tpu.trace_start"() <{level = 10 : i32, message = "hse,hed->hsd"}> : () -> ()
    %cst_27 = arith.constant dense<0.000000e+00> : vector<4x5x8xf32>
    %29 = tpu.matmul %18, %14, %cst_27 {dimension_numbers = #tpu.dot_dimension_numbers<[2], [1], [1], [2], [0, 0, 0, 1, 1, 2], [0], [0]>} : vector<4x5x32xf32>, vector<4x32x8xf32>, vector<4x5x8xf32> -> vector<4x5x8xf32>
    "tpu.trace_stop"() : () -> ()
    "tpu.trace_start"() <{level = 10 : i32, message = "hsm,htm->hst"}> : () -> ()
    %cst_28 = arith.constant dense<0.000000e+00> : vector<4x5x5xf32>
    %30 = tpu.matmul %23, %28, %cst_28 {dimension_numbers = #tpu.dot_dimension_numbers<[2], [2], [1], [1], [0, 0, 0, 1, 1, 1], [0], [0]>} : vector<4x5x16xf32>, vector<4x5x16xf32>, vector<4x5x5xf32> -> vector<4x5x5xf32>
    "tpu.trace_stop"() : () -> ()
    %cst_29 = arith.constant dense<0.000000e+00> : vector<4x5xf32>
    %31 = vector.multi_reduction <add>, %30, %cst_29 [2] : vector<4x5x5xf32> to vector<4x5xf32>
    %32 = vector.shape_cast %31 : vector<4x5xf32> to vector<4x5x1xf32>
    %33 = tpu.reciprocal %32 {approx = true} : vector<4x5x1xf32> -> vector<4x5x1xf32>
    "tpu.trace_start"() <{level = 10 : i32, message = "hst,htd->hsd"}> : () -> ()
    %cst_30 = arith.constant dense<0.000000e+00> : vector<4x5x8xf32>
    %34 = tpu.matmul %30, %29, %cst_30 {dimension_numbers = #tpu.dot_dimension_numbers<[2], [1], [1], [2], [0, 0, 0, 1, 1, 2], [0], [0]>} : vector<4x5x5xf32>, vector<4x5x8xf32>, vector<4x5x8xf32> -> vector<4x5x8xf32>
    "tpu.trace_stop"() : () -> ()
    %35 = vector.broadcast %33 : vector<4x5x1xf32> to vector<4x5x8xf32>
    %36 = arith.mulf %35, %34 : vector<4x5x8xf32>
    "tpu.trace_start"() <{level = 10 : i32, message = "hsd,hed->hse"}> : () -> ()
    %cst_31 = arith.constant dense<0.000000e+00> : vector<4x5x32xf32>
    %37 = tpu.matmul %36, %16, %cst_31 {dimension_numbers = #tpu.dot_dimension_numbers<[2], [2], [1], [1], [0, 0, 0, 1, 1, 1], [0], [0]>} : vector<4x5x8xf32>, vector<4x32x8xf32>, vector<4x5x32xf32> -> vector<4x5x32xf32>
    "tpu.trace_stop"() : () -> ()
    %cst_32 = arith.constant dense<0.000000e+00> : vector<5x32xf32>
    %38 = vector.multi_reduction <add>, %37, %cst_32 [0] : vector<4x5x32xf32> to vector<5x32xf32>
    %39 = arith.addf %8, %38 : vector<5x32xf32>
    %c0_33 = arith.constant 0 : index
    %c0_34 = arith.constant 0 : index
    %c0_35 = arith.constant 0 : index
    %40 = vector.load %arg8[%c0_33, %c0_34, %c0_35] : memref<2x8x128xf32, #tpu.memory_space<vmem>>, vector<1x1x32xf32>
    %41 = vector.shape_cast %40 : vector<1x1x32xf32> to vector<1x32xf32>
    %42 = vector.broadcast %41 : vector<1x32xf32> to vector<5x32xf32>
    %43 = arith.addf %39, %42 : vector<5x32xf32>
    %c0_36 = arith.constant 0 : index
    %c1_37 = arith.constant 1 : index
    %c0_38 = arith.constant 0 : index
    %44 = vector.load %arg8[%c0_36, %c1_37, %c0_38] : memref<2x8x128xf32, #tpu.memory_space<vmem>>, vector<1x1x32xf32>
    %45 = vector.shape_cast %44 : vector<1x1x32xf32> to vector<1x32xf32>
    %c0_39 = arith.constant 0 : index
    %c2 = arith.constant 2 : index
    %c0_40 = arith.constant 0 : index
    %46 = vector.load %arg8[%c0_39, %c2, %c0_40] : memref<2x8x128xf32, #tpu.memory_space<vmem>>, vector<1x1x32xf32>
    %47 = vector.shape_cast %46 : vector<1x1x32xf32> to vector<1x32xf32>
    %cst_41 = arith.constant dense<0.000000e+00> : vector<5xf32>
    %48 = vector.multi_reduction <add>, %43, %cst_41 [1] : vector<5x32xf32> to vector<5xf32>
    %49 = vector.shape_cast %48 : vector<5xf32> to vector<5x1xf32>
    %cst_42 = arith.constant 3.200000e+01 : f32
    %50 = vector.broadcast %cst_42 : f32 to vector<5x1xf32>
    %51 = arith.divf %49, %50 : vector<5x1xf32>
    %52 = vector.broadcast %51 : vector<5x1xf32> to vector<5x32xf32>
    %53 = arith.subf %43, %52 : vector<5x32xf32>
    %54 = arith.mulf %53, %53 : vector<5x32xf32>
    %cst_43 = arith.constant dense<0.000000e+00> : vector<5xf32>
    %55 = vector.multi_reduction <add>, %54, %cst_43 [1] : vector<5x32xf32> to vector<5xf32>
    %56 = vector.shape_cast %55 : vector<5xf32> to vector<5x1xf32>
    %cst_44 = arith.constant 3.200000e+01 : f32
    %57 = vector.broadcast %cst_44 : f32 to vector<5x1xf32>
    %58 = arith.divf %56, %57 : vector<5x1xf32>
    %59 = vector.broadcast %51 : vector<5x1xf32> to vector<5x32xf32>
    %60 = arith.subf %43, %59 : vector<5x32xf32>
    %cst_45 = arith.constant 9.99999974E-6 : f32
    %61 = vector.broadcast %cst_45 : f32 to vector<5x1xf32>
    %62 = arith.addf %58, %61 : vector<5x1xf32>
    %63 = math.rsqrt %62 : vector<5x1xf32>
    %64 = vector.broadcast %63 : vector<5x1xf32> to vector<5x32xf32>
    %65 = arith.mulf %60, %64 : vector<5x32xf32>
    %66 = vector.broadcast %45 : vector<1x32xf32> to vector<5x32xf32>
    %67 = arith.mulf %65, %66 : vector<5x32xf32>
    %68 = vector.broadcast %47 : vector<1x32xf32> to vector<5x32xf32>
    %69 = arith.addf %67, %68 : vector<5x32xf32>
    %c0_46 = arith.constant 0 : index
    %c0_47 = arith.constant 0 : index
    %c0_48 = arith.constant 0 : index
    %70 = vector.load %arg6[%c0_46, %c0_47, %c0_48] : memref<2x32x64xf32, #tpu.memory_space<vmem>>, vector<1x32x64xf32>
    %71 = vector.shape_cast %70 : vector<1x32x64xf32> to vector<32x64xf32>
    %cst_49 = arith.constant dense<0.000000e+00> : vector<5x64xf32>
    %72 = tpu.matmul %69, %71, %cst_49 {dimension_numbers = #tpu.dot_dimension_numbers<[1], [0], [0], [1], [0, 0, 1, 1], [], []>} : vector<5x32xf32>, vector<32x64xf32>, vector<5x64xf32> -> vector<5x64xf32>
    %c0_50 = arith.constant 0 : index
    %c3 = arith.constant 3 : index
    %c0_51 = arith.constant 0 : index
    %73 = vector.load %arg8[%c0_50, %c3, %c0_51] : memref<2x8x128xf32, #tpu.memory_space<vmem>>, vector<1x1x64xf32>
    %74 = vector.shape_cast %73 : vector<1x1x64xf32> to vector<1x64xf32>
    %75 = vector.broadcast %74 : vector<1x64xf32> to vector<5x64xf32>
    %76 = arith.addf %72, %75 : vector<5x64xf32>
    %cst_52 = arith.constant 5.000000e-01 : f32
    %77 = vector.broadcast %cst_52 : f32 to vector<5x64xf32>
    %78 = arith.mulf %77, %76 : vector<5x64xf32>
    %cst_53 = arith.constant 4.471500e-02 : f32
    %79 = vector.broadcast %cst_53 : f32 to vector<5x64xf32>
    %80 = arith.mulf %79, %76 : vector<5x64xf32>
    %81 = arith.mulf %80, %76 : vector<5x64xf32>
    %82 = arith.mulf %81, %76 : vector<5x64xf32>
    %83 = arith.addf %76, %82 : vector<5x64xf32>
    %cst_54 = arith.constant 0.797884583 : f32
    %84 = vector.broadcast %cst_54 : f32 to vector<5x64xf32>
    %85 = arith.mulf %84, %83 : vector<5x64xf32>
    %86 = math.tanh %85 : vector<5x64xf32>
    %cst_55 = arith.constant 1.000000e+00 : f32
    %87 = vector.broadcast %cst_55 : f32 to vector<5x64xf32>
    %88 = arith.addf %87, %86 : vector<5x64xf32>
    %89 = arith.mulf %78, %88 : vector<5x64xf32>
    %c0_56 = arith.constant 0 : index
    %c0_57 = arith.constant 0 : index
    %c0_58 = arith.constant 0 : index
    %90 = vector.load %arg7[%c0_56, %c0_57, %c0_58] : memref<2x64x32xf32, #tpu.memory_space<vmem>>, vector<1x64x32xf32>
    %91 = vector.shape_cast %90 : vector<1x64x32xf32> to vector<64x32xf32>
    %cst_59 = arith.constant dense<0.000000e+00> : vector<5x32xf32>
    %92 = tpu.matmul %89, %91, %cst_59 {dimension_numbers = #tpu.dot_dimension_numbers<[1], [0], [0], [1], [0, 0, 1, 1], [], []>} : vector<5x64xf32>, vector<64x32xf32>, vector<5x32xf32> -> vector<5x32xf32>
    %93 = arith.addf %43, %92 : vector<5x32xf32>
    %c0_60 = arith.constant 0 : index
    %c4 = arith.constant 4 : index
    %c0_61 = arith.constant 0 : index
    %94 = vector.load %arg8[%c0_60, %c4, %c0_61] : memref<2x8x128xf32, #tpu.memory_space<vmem>>, vector<1x1x32xf32>
    %95 = vector.shape_cast %94 : vector<1x1x32xf32> to vector<1x32xf32>
    %96 = vector.broadcast %95 : vector<1x32xf32> to vector<5x32xf32>
    %97 = arith.addf %93, %96 : vector<5x32xf32>
    %c2_62 = arith.constant 2 : index
    %c0_63 = arith.constant 0 : index
    %c0_64 = arith.constant 0 : index
    %c0_65 = arith.constant 0 : index
    %98 = vector.load %arg4[%c2_62, %c0_63, %c0_64, %c0_65] : memref<4x4x32x16xf32, #tpu.memory_space<vmem>>, vector<1x4x32x16xf32>
    %99 = vector.shape_cast %98 : vector<1x4x32x16xf32> to vector<4x32x16xf32>
    %c3_66 = arith.constant 3 : index
    %c0_67 = arith.constant 0 : index
    %c0_68 = arith.constant 0 : index
    %c0_69 = arith.constant 0 : index
    %100 = vector.load %arg4[%c3_66, %c0_67, %c0_68, %c0_69] : memref<4x4x32x16xf32, #tpu.memory_space<vmem>>, vector<1x4x32x16xf32>
    %101 = vector.shape_cast %100 : vector<1x4x32x16xf32> to vector<4x32x16xf32>
    %c2_70 = arith.constant 2 : index
    %c0_71 = arith.constant 0 : index
    %c0_72 = arith.constant 0 : index
    %c0_73 = arith.constant 0 : index
    %102 = vector.load %arg5[%c2_70, %c0_71, %c0_72, %c0_73] : memref<4x4x32x8xf32, #tpu.memory_space<vmem>>, vector<1x4x32x8xf32>
    %103 = vector.shape_cast %102 : vector<1x4x32x8xf32> to vector<4x32x8xf32>
    %c3_74 = arith.constant 3 : index
    %c0_75 = arith.constant 0 : index
    %c0_76 = arith.constant 0 : index
    %c0_77 = arith.constant 0 : index
    %104 = vector.load %arg5[%c3_74, %c0_75, %c0_76, %c0_77] : memref<4x4x32x8xf32, #tpu.memory_space<vmem>>, vector<1x4x32x8xf32>
    %105 = vector.shape_cast %104 : vector<1x4x32x8xf32> to vector<4x32x8xf32>
    %106 = vector.shape_cast %97 : vector<5x32xf32> to vector<1x5x32xf32>
    %107 = vector.broadcast %106 : vector<1x5x32xf32> to vector<4x5x32xf32>
    "tpu.trace_start"() <{level = 10 : i32, message = "hse,hem->hsm"}> : () -> ()
    %cst_78 = arith.constant dense<0.000000e+00> : vector<4x5x16xf32>
    %108 = tpu.matmul %107, %99, %cst_78 {dimension_numbers = #tpu.dot_dimension_numbers<[2], [1], [1], [2], [0, 0, 0, 1, 1, 2], [0], [0]>} : vector<4x5x32xf32>, vector<4x32x16xf32>, vector<4x5x16xf32> -> vector<4x5x16xf32>
    "tpu.trace_stop"() : () -> ()
    %cst_79 = arith.constant 0.000000e+00 : f32
    %109 = vector.broadcast %cst_79 : f32 to vector<4x5x16xf32>
    %110 = arith.maximumf %108, %109 : vector<4x5x16xf32>
    %cst_80 = arith.constant 1.000000e-03 : f32
    %111 = vector.broadcast %cst_80 : f32 to vector<4x5x16xf32>
    %112 = arith.addf %110, %111 : vector<4x5x16xf32>
    "tpu.trace_start"() <{level = 10 : i32, message = "hse,hem->hsm"}> : () -> ()
    %cst_81 = arith.constant dense<0.000000e+00> : vector<4x5x16xf32>
    %113 = tpu.matmul %107, %101, %cst_81 {dimension_numbers = #tpu.dot_dimension_numbers<[2], [1], [1], [2], [0, 0, 0, 1, 1, 2], [0], [0]>} : vector<4x5x32xf32>, vector<4x32x16xf32>, vector<4x5x16xf32> -> vector<4x5x16xf32>
    "tpu.trace_stop"() : () -> ()
    %cst_82 = arith.constant 0.000000e+00 : f32
    %114 = vector.broadcast %cst_82 : f32 to vector<4x5x16xf32>
    %115 = arith.maximumf %113, %114 : vector<4x5x16xf32>
    %cst_83 = arith.constant 1.000000e-03 : f32
    %116 = vector.broadcast %cst_83 : f32 to vector<4x5x16xf32>
    %117 = arith.addf %115, %116 : vector<4x5x16xf32>
    "tpu.trace_start"() <{level = 10 : i32, message = "hse,hed->hsd"}> : () -> ()
    %cst_84 = arith.constant dense<0.000000e+00> : vector<4x5x8xf32>
    %118 = tpu.matmul %107, %103, %cst_84 {dimension_numbers = #tpu.dot_dimension_numbers<[2], [1], [1], [2], [0, 0, 0, 1, 1, 2], [0], [0]>} : vector<4x5x32xf32>, vector<4x32x8xf32>, vector<4x5x8xf32> -> vector<4x5x8xf32>
    "tpu.trace_stop"() : () -> ()
    "tpu.trace_start"() <{level = 10 : i32, message = "hsm,htm->hst"}> : () -> ()
    %cst_85 = arith.constant dense<0.000000e+00> : vector<4x5x5xf32>
    %119 = tpu.matmul %112, %117, %cst_85 {dimension_numbers = #tpu.dot_dimension_numbers<[2], [2], [1], [1], [0, 0, 0, 1, 1, 1], [0], [0]>} : vector<4x5x16xf32>, vector<4x5x16xf32>, vector<4x5x5xf32> -> vector<4x5x5xf32>
    "tpu.trace_stop"() : () -> ()
    %cst_86 = arith.constant dense<0.000000e+00> : vector<4x5xf32>
    %120 = vector.multi_reduction <add>, %119, %cst_86 [2] : vector<4x5x5xf32> to vector<4x5xf32>
    %121 = vector.shape_cast %120 : vector<4x5xf32> to vector<4x5x1xf32>
    %122 = tpu.reciprocal %121 {approx = true} : vector<4x5x1xf32> -> vector<4x5x1xf32>
    "tpu.trace_start"() <{level = 10 : i32, message = "hst,htd->hsd"}> : () -> ()
    %cst_87 = arith.constant dense<0.000000e+00> : vector<4x5x8xf32>
    %123 = tpu.matmul %119, %118, %cst_87 {dimension_numbers = #tpu.dot_dimension_numbers<[2], [1], [1], [2], [0, 0, 0, 1, 1, 2], [0], [0]>} : vector<4x5x5xf32>, vector<4x5x8xf32>, vector<4x5x8xf32> -> vector<4x5x8xf32>
    "tpu.trace_stop"() : () -> ()
    %124 = vector.broadcast %122 : vector<4x5x1xf32> to vector<4x5x8xf32>
    %125 = arith.mulf %124, %123 : vector<4x5x8xf32>
    "tpu.trace_start"() <{level = 10 : i32, message = "hsd,hed->hse"}> : () -> ()
    %cst_88 = arith.constant dense<0.000000e+00> : vector<4x5x32xf32>
    %126 = tpu.matmul %125, %105, %cst_88 {dimension_numbers = #tpu.dot_dimension_numbers<[2], [2], [1], [1], [0, 0, 0, 1, 1, 1], [0], [0]>} : vector<4x5x8xf32>, vector<4x32x8xf32>, vector<4x5x32xf32> -> vector<4x5x32xf32>
    "tpu.trace_stop"() : () -> ()
    %cst_89 = arith.constant dense<0.000000e+00> : vector<5x32xf32>
    %127 = vector.multi_reduction <add>, %126, %cst_89 [0] : vector<4x5x32xf32> to vector<5x32xf32>
    %128 = arith.addf %97, %127 : vector<5x32xf32>
    %c1_90 = arith.constant 1 : index
    %c0_91 = arith.constant 0 : index
    %c0_92 = arith.constant 0 : index
    %129 = vector.load %arg8[%c1_90, %c0_91, %c0_92] : memref<2x8x128xf32, #tpu.memory_space<vmem>>, vector<1x1x32xf32>
    %130 = vector.shape_cast %129 : vector<1x1x32xf32> to vector<1x32xf32>
    %131 = vector.broadcast %130 : vector<1x32xf32> to vector<5x32xf32>
    %132 = arith.addf %128, %131 : vector<5x32xf32>
    %c1_93 = arith.constant 1 : index
    %c1_94 = arith.constant 1 : index
    %c0_95 = arith.constant 0 : index
    %133 = vector.load %arg8[%c1_93, %c1_94, %c0_95] : memref<2x8x128xf32, #tpu.memory_space<vmem>>, vector<1x1x32xf32>
    %134 = vector.shape_cast %133 : vector<1x1x32xf32> to vector<1x32xf32>
    %c1_96 = arith.constant 1 : index
    %c2_97 = arith.constant 2 : index
    %c0_98 = arith.constant 0 : index
    %135 = vector.load %arg8[%c1_96, %c2_97, %c0_98] : memref<2x8x128xf32, #tpu.memory_space<vmem>>, vector<1x1x32xf32>
    %136 = vector.shape_cast %135 : vector<1x1x32xf32> to vector<1x32xf32>
    %cst_99 = arith.constant dense<0.000000e+00> : vector<5xf32>
    %137 = vector.multi_reduction <add>, %132, %cst_99 [1] : vector<5x32xf32> to vector<5xf32>
    %138 = vector.shape_cast %137 : vector<5xf32> to vector<5x1xf32>
    %cst_100 = arith.constant 3.200000e+01 : f32
    %139 = vector.broadcast %cst_100 : f32 to vector<5x1xf32>
    %140 = arith.divf %138, %139 : vector<5x1xf32>
    %141 = vector.broadcast %140 : vector<5x1xf32> to vector<5x32xf32>
    %142 = arith.subf %132, %141 : vector<5x32xf32>
    %143 = arith.mulf %142, %142 : vector<5x32xf32>
    %cst_101 = arith.constant dense<0.000000e+00> : vector<5xf32>
    %144 = vector.multi_reduction <add>, %143, %cst_101 [1] : vector<5x32xf32> to vector<5xf32>
    %145 = vector.shape_cast %144 : vector<5xf32> to vector<5x1xf32>
    %cst_102 = arith.constant 3.200000e+01 : f32
    %146 = vector.broadcast %cst_102 : f32 to vector<5x1xf32>
    %147 = arith.divf %145, %146 : vector<5x1xf32>
    %148 = vector.broadcast %140 : vector<5x1xf32> to vector<5x32xf32>
    %149 = arith.subf %132, %148 : vector<5x32xf32>
    %cst_103 = arith.constant 9.99999974E-6 : f32
    %150 = vector.broadcast %cst_103 : f32 to vector<5x1xf32>
    %151 = arith.addf %147, %150 : vector<5x1xf32>
    %152 = math.rsqrt %151 : vector<5x1xf32>
    %153 = vector.broadcast %152 : vector<5x1xf32> to vector<5x32xf32>
    %154 = arith.mulf %149, %153 : vector<5x32xf32>
    %155 = vector.broadcast %134 : vector<1x32xf32> to vector<5x32xf32>
    %156 = arith.mulf %154, %155 : vector<5x32xf32>
    %157 = vector.broadcast %136 : vector<1x32xf32> to vector<5x32xf32>
    %158 = arith.addf %156, %157 : vector<5x32xf32>
    %c1_104 = arith.constant 1 : index
    %c0_105 = arith.constant 0 : index
    %c0_106 = arith.constant 0 : index
    %159 = vector.load %arg6[%c1_104, %c0_105, %c0_106] : memref<2x32x64xf32, #tpu.memory_space<vmem>>, vector<1x32x64xf32>
    %160 = vector.shape_cast %159 : vector<1x32x64xf32> to vector<32x64xf32>
    %cst_107 = arith.constant dense<0.000000e+00> : vector<5x64xf32>
    %161 = tpu.matmul %158, %160, %cst_107 {dimension_numbers = #tpu.dot_dimension_numbers<[1], [0], [0], [1], [0, 0, 1, 1], [], []>} : vector<5x32xf32>, vector<32x64xf32>, vector<5x64xf32> -> vector<5x64xf32>
    %c1_108 = arith.constant 1 : index
    %c3_109 = arith.constant 3 : index
    %c0_110 = arith.constant 0 : index
    %162 = vector.load %arg8[%c1_108, %c3_109, %c0_110] : memref<2x8x128xf32, #tpu.memory_space<vmem>>, vector<1x1x64xf32>
    %163 = vector.shape_cast %162 : vector<1x1x64xf32> to vector<1x64xf32>
    %164 = vector.broadcast %163 : vector<1x64xf32> to vector<5x64xf32>
    %165 = arith.addf %161, %164 : vector<5x64xf32>
    %cst_111 = arith.constant 5.000000e-01 : f32
    %166 = vector.broadcast %cst_111 : f32 to vector<5x64xf32>
    %167 = arith.mulf %166, %165 : vector<5x64xf32>
    %cst_112 = arith.constant 4.471500e-02 : f32
    %168 = vector.broadcast %cst_112 : f32 to vector<5x64xf32>
    %169 = arith.mulf %168, %165 : vector<5x64xf32>
    %170 = arith.mulf %169, %165 : vector<5x64xf32>
    %171 = arith.mulf %170, %165 : vector<5x64xf32>
    %172 = arith.addf %165, %171 : vector<5x64xf32>
    %cst_113 = arith.constant 0.797884583 : f32
    %173 = vector.broadcast %cst_113 : f32 to vector<5x64xf32>
    %174 = arith.mulf %173, %172 : vector<5x64xf32>
    %175 = math.tanh %174 : vector<5x64xf32>
    %cst_114 = arith.constant 1.000000e+00 : f32
    %176 = vector.broadcast %cst_114 : f32 to vector<5x64xf32>
    %177 = arith.addf %176, %175 : vector<5x64xf32>
    %178 = arith.mulf %167, %177 : vector<5x64xf32>
    %c1_115 = arith.constant 1 : index
    %c0_116 = arith.constant 0 : index
    %c0_117 = arith.constant 0 : index
    %179 = vector.load %arg7[%c1_115, %c0_116, %c0_117] : memref<2x64x32xf32, #tpu.memory_space<vmem>>, vector<1x64x32xf32>
    %180 = vector.shape_cast %179 : vector<1x64x32xf32> to vector<64x32xf32>
    %cst_118 = arith.constant dense<0.000000e+00> : vector<5x32xf32>
    %181 = tpu.matmul %178, %180, %cst_118 {dimension_numbers = #tpu.dot_dimension_numbers<[1], [0], [0], [1], [0, 0, 1, 1], [], []>} : vector<5x64xf32>, vector<64x32xf32>, vector<5x32xf32> -> vector<5x32xf32>
    %182 = arith.addf %132, %181 : vector<5x32xf32>
    %c1_119 = arith.constant 1 : index
    %c4_120 = arith.constant 4 : index
    %c0_121 = arith.constant 0 : index
    %183 = vector.load %arg8[%c1_119, %c4_120, %c0_121] : memref<2x8x128xf32, #tpu.memory_space<vmem>>, vector<1x1x32xf32>
    %184 = vector.shape_cast %183 : vector<1x1x32xf32> to vector<1x32xf32>
    %185 = vector.broadcast %184 : vector<1x32xf32> to vector<5x32xf32>
    %186 = arith.addf %182, %185 : vector<5x32xf32>
    %187 = vector.extract_strided_slice %186 {offsets = [0, 0], sizes = [1, 32], strides = [1, 1]} : vector<5x32xf32> to vector<1x32xf32>
    %c32 = arith.constant 32 : index
    %c0_122 = arith.constant 0 : index
    %188 = vector.load %arg9[%c32, %c0_122] : memref<40x128xf32, #tpu.memory_space<vmem>>, vector<1x32xf32>
    %c33 = arith.constant 33 : index
    %c0_123 = arith.constant 0 : index
    %189 = vector.load %arg9[%c33, %c0_123] : memref<40x128xf32, #tpu.memory_space<vmem>>, vector<1x32xf32>
    %cst_124 = arith.constant dense<0.000000e+00> : vector<1xf32>
    %190 = vector.multi_reduction <add>, %187, %cst_124 [1] : vector<1x32xf32> to vector<1xf32>
    %191 = vector.shape_cast %190 : vector<1xf32> to vector<1x1xf32>
    %cst_125 = arith.constant 3.200000e+01 : f32
    %192 = vector.broadcast %cst_125 : f32 to vector<1x1xf32>
    %193 = arith.divf %191, %192 : vector<1x1xf32>
    %194 = vector.broadcast %193 : vector<1x1xf32> to vector<1x32xf32>
    %195 = arith.subf %187, %194 : vector<1x32xf32>
    %196 = arith.mulf %195, %195 : vector<1x32xf32>
    %cst_126 = arith.constant dense<0.000000e+00> : vector<1xf32>
    %197 = vector.multi_reduction <add>, %196, %cst_126 [1] : vector<1x32xf32> to vector<1xf32>
    %198 = vector.shape_cast %197 : vector<1xf32> to vector<1x1xf32>
    %cst_127 = arith.constant 3.200000e+01 : f32
    %199 = vector.broadcast %cst_127 : f32 to vector<1x1xf32>
    %200 = arith.divf %198, %199 : vector<1x1xf32>
    %201 = vector.broadcast %193 : vector<1x1xf32> to vector<1x32xf32>
    %202 = arith.subf %187, %201 : vector<1x32xf32>
    %cst_128 = arith.constant 9.99999974E-6 : f32
    %203 = vector.broadcast %cst_128 : f32 to vector<1x1xf32>
    %204 = arith.addf %200, %203 : vector<1x1xf32>
    %205 = math.rsqrt %204 : vector<1x1xf32>
    %206 = vector.broadcast %205 : vector<1x1xf32> to vector<1x32xf32>
    %207 = arith.mulf %202, %206 : vector<1x32xf32>
    %208 = arith.mulf %207, %188 : vector<1x32xf32>
    %209 = arith.addf %208, %189 : vector<1x32xf32>
    %c0_129 = arith.constant 0 : index
    %c0_130 = arith.constant 0 : index
    %210 = vector.load %arg9[%c0_129, %c0_130] : memref<40x128xf32, #tpu.memory_space<vmem>>, vector<32x128xf32>
    %cst_131 = arith.constant dense<0.000000e+00> : vector<1x128xf32>
    %211 = tpu.matmul %209, %210, %cst_131 {dimension_numbers = #tpu.dot_dimension_numbers<[1], [0], [0], [1], [0, 0, 1, 1], [], []>} : vector<1x32xf32>, vector<32x128xf32>, vector<1x128xf32> -> vector<1x128xf32>
    %c34 = arith.constant 34 : index
    %c0_132 = arith.constant 0 : index
    %212 = vector.load %arg9[%c34, %c0_132] : memref<40x128xf32, #tpu.memory_space<vmem>>, vector<1x128xf32>
    %213 = arith.addf %211, %212 : vector<1x128xf32>
    %c0_133 = arith.constant 0 : index
    %c0_134 = arith.constant 0 : index
    %c0_135 = arith.constant 0 : index
    %214 = vector.load %arg10[%c0_133, %c0_134, %c0_135] : memref<1x1x128xf32, #tpu.memory_space<vmem>>, vector<1x1x128xf32>
    %215 = vector.shape_cast %214 : vector<1x1x128xf32> to vector<1x128xf32>
    %216 = vector.shape_cast %213 : vector<1x128xf32> to vector<1x1x128xf32>
    tpu.vector_store %arg10[%c0_133, %c0_134, %c0_135], %216 {strides = array<i32>} : memref<1x1x128xf32, #tpu.memory_space<vmem>>, vector<1x1x128xf32>,
    return
  }
  func.func @transform_0(%arg0: i32) -> (i32, i32, i32) {
    %c0_i32 = arith.constant 0 : i32
    %c0_i32_0 = arith.constant 0 : i32
    %c0_i32_1 = arith.constant 0 : i32
    return %arg0, %c0_i32, %c0_i32_0 : i32, i32, i32
  }
  func.func @transform_1(%arg0: i32) -> (i32, i32) {
    %c0_i32 = arith.constant 0 : i32
    %c0_i32_0 = arith.constant 0 : i32
    %c0_i32_1 = arith.constant 0 : i32
    return %c0_i32, %c0_i32_0 : i32, i32
  }
  func.func @transform_2(%arg0: i32) -> (i32, i32) {
    %c0_i32 = arith.constant 0 : i32
    %c0_i32_0 = arith.constant 0 : i32
    %c0_i32_1 = arith.constant 0 : i32
    return %c0_i32, %c0_i32_0 : i32, i32
  }
  func.func @transform_3(%arg0: i32) -> (i32, i32, i32, i32) {
    %c0_i32 = arith.constant 0 : i32
    %c0_i32_0 = arith.constant 0 : i32
    %c0_i32_1 = arith.constant 0 : i32
    %c0_i32_2 = arith.constant 0 : i32
    %c0_i32_3 = arith.constant 0 : i32
    return %c0_i32, %c0_i32_0, %c0_i32_1, %c0_i32_2 : i32, i32, i32, i32
  }
  func.func @transform_4(%arg0: i32) -> (i32, i32, i32, i32) {
    %c0_i32 = arith.constant 0 : i32
    %c0_i32_0 = arith.constant 0 : i32
    %c0_i32_1 = arith.constant 0 : i32
    %c0_i32_2 = arith.constant 0 : i32
    %c0_i32_3 = arith.constant 0 : i32
    return %c0_i32, %c0_i32_0, %c0_i32_1, %c0_i32_2 : i32, i32, i32, i32
  }
  func.func @transform_5(%arg0: i32) -> (i32, i32, i32) {
    %c0_i32 = arith.constant 0 : i32
    %c0_i32_0 = arith.constant 0 : i32
    %c0_i32_1 = arith.constant 0 : i32
    %c0_i32_2 = arith.constant 0 : i32
    return %c0_i32, %c0_i32_0, %c0_i32_1 : i32, i32, i32
  }
  func.func @transform_6(%arg0: i32) -> (i32, i32, i32) {
    %c0_i32 = arith.constant 0 : i32
    %c0_i32_0 = arith.constant 0 : i32
    %c0_i32_1 = arith.constant 0 : i32
    %c0_i32_2 = arith.constant 0 : i32
    return %c0_i32, %c0_i32_0, %c0_i32_1 : i32, i32, i32
  }
  func.func @transform_7(%arg0: i32) -> (i32, i32, i32) {
    %c0_i32 = arith.constant 0 : i32
    %c0_i32_0 = arith.constant 0 : i32
    %c0_i32_1 = arith.constant 0 : i32
    %c0_i32_2 = arith.constant 0 : i32
    return %c0_i32, %c0_i32_0, %c0_i32_1 : i32, i32, i32
  }
  func.func @transform_8(%arg0: i32) -> (i32, i32) {
    %c0_i32 = arith.constant 0 : i32
    %c0_i32_0 = arith.constant 0 : i32
    %c0_i32_1 = arith.constant 0 : i32
    return %c0_i32, %c0_i32_0 : i32, i32
  }
  func.func @transform_9(%arg0: i32) -> (i32, i32, i32) {
    %c0_i32 = arith.constant 0 : i32
    %c0_i32_0 = arith.constant 0 : i32
    %c0_i32_1 = arith.constant 0 : i32
    return %arg0, %c0_i32, %c0_i32_0 : i32, i32, i32
  }
}

</mosaic_0001>

<bundles_post_ra>
// kernel: vit_forward.1
= control target key start
LH: loop header
LB: loop body
LE: loop exit
PB: predicated region body
PF: predicated region fallthrough
CT: control target
= control target key end

     0   :  { %14 = vsyncpa [#allocation3], 0  ;;  %s3419_s0 = inlined_call_operand.vmem [shape: f32[2,4,192], index: 0, kind: input, shape index: {}]   ;;  %s3420_s1 = inlined_call_operand.vmem [shape: f32[192,32], index: 1, kind: input, shape index: {}]   ;;  %s3421_s2 = inlined_call_operand.vmem [shape: f32[5,32], index: 2, kind: input, shape index: {}]   ;;  %s3422_s3 = inlined_call_operand.vmem [shape: f32[4,4,32,16], index: 3, kind: input, shape index: {}]   ;;  %s3423_s4 = inlined_call_operand.vmem [shape: f32[4,4,32,8], index: 4, kind: input, shape index: {}]   ;;  %s3424_s5 = inlined_call_operand.vmem [shape: f32[2,32,64], index: 5, kind: input, shape index: {}]   ;;  %s3425_s6 = inlined_call_operand.vmem [shape: f32[2,64,32], index: 6, kind: input, shape index: {}]   ;;  %s3426_s7 = inlined_call_operand.vmem [shape: f32[2,8,128], index: 7, kind: input, shape index: {}]   ;;  %s3427_s8 = inlined_call_operand.vmem [shape: f32[40,128], index: 8, kind: input, shape index: {}]   ;;  %s3428_s9 = inlined_call_operand.hbm [shape: f32[2,1,128], index: 9, kind: output, shape index: {}]  }
   0x1   :  { %16 = vsyncpa [#allocation3 + $0x1], 0  ;;  %s2582_s30 = smov 0   ;;  %s2584_s10 = smov 0  }
   0x2   :  { %s2586_s11 = smov 0   ;;  %s2588_s12 = smov 0  }
   0x3 LB: > { %s2603_s13 = sadd.s32 4294967295, %s2529_s12   ;;  %s2165_s14 = sadd.s32 4294967294, %s2529_s12   ;;  %s2529_s12 = sphi %s2588_s12, %s3436_s12   ;;  %s2525_s11 = sphi %s2586_s11, %s3435_s11   ;;  %s2521_s10 = sphi %s2584_s10, %s3434_s10   ;;  %s2517_s30 = sphi %s2582_s30, %s3433_s30  }
   0x4   : > { %s2607_s15 = sadd.s32 1, %s2529_s12   ;;  %s223_s16 = sadd.s32 1, %s2525_s11 }
   0x5   : > { %s220_s17 = ssub.s32 %s2529_s12, %s2607_s15  ;;  %p233_p0 = scmp.ne.s32.totalorder %s2525_s11, %s2521_s10 }
   0x6   : > { %p221_p1 = scmp.eq.s32.totalorder %s220_s17, 0  ;;  %p234_p2 = scmp.eq.s32.totalorder %s2603_s13, 1 }
   0x7   : > { %p239_p3 = scmp.ne.s32.totalorder %s2521_s10, %s2517_s30  ;;  %p240_p4 = scmp.eq.s32.totalorder %s2165_s14, 1 }
   0x8   : > { %s2618_s18 = scalar_select %p221_p1, %s2525_s11, %s223_s16  }
   0x9   : > { %p2620_p5 = por %p234_p2, %p233_p0  ;;  %p2624_p6 = por %p240_p4, %p239_p3 }
   0xa   : > { %3429 = sst [smem:[#allocation5_spill]] %s2618_s18  ;;  %p2168_p7 = scmp.ge.s32.totalorder %s2529_s12, 1 }
   0xb   : > { %p290_p8 = scmp.lt.s32.totalorder %s2529_s12, 3 }
   0xd   : > { %p291_p9 = pnand %p2168_p7, %p290_p8 }
   0xe   : > { %p325_p10 = scmp.lt.s32.totalorder (!%p291_p9), %s2603_s13, 1  ;;  %s2106_s25 = scalar_lea.hbm (!%p291_p9), %s3428_s9, %s2603_s13 }
   0xf   : > { %294 = sbr.rel (%p291_p9) target bundleno = 2823 (0xb07), region = 56  ;;  %s2110_s16 = sshll.u32 (!%p291_p9), %s2106_s25, 4  ;;  %s2111_s16 = int_to_ptr.hbm [resolvable:$true] %s2110_s16 }
  0x10   : > { %s2481_s17 = sshra.s32 (!%p291_p9), %s2111_s16, 4  ;;  %s2487_s24 = scalar_lea.hbm (!%p291_p9), %s3428_s9, 2  ;;  %s2482_s17 = int_to_ptr.hbm [resolvable:$true] %s2481_s17 }
  0x11   : > { %s2483_s21 = scalar_lea.hbm (!%p291_p9), %s2482_s17, 1  ;;  %p2488_p0 = scmp.lt.s32.totalorder (!%p291_p9), %s2482_s17, %s3428_s9 }
  0x12   : > { %p2484_p11 = scmp.ne.s32.totalorder (!%p291_p9), %s2482_s17, %s2483_s21  ;;  %p2489_p1 = scmp.lt.s32.totalorder (!%p291_p9), %s2487_s24, %s2483_s21 }
  0x14   : > { %v346_v0 = vld [vmem:[%s3420_s1 + $0x78] sm:$0xff]  ;;  %v345_v1 = vld [vmem:[%s3420_s1 + $0x70] sm:$0xff]  ;;  %v344_v2 = vld [vmem:[%s3420_s1 + $0x68] sm:$0xff]  ;;  %s326_s27 = scalar_select %p325_p10, %s2603_s13, 1  ;;  %vm364_vm0 = vcmask 523264   ;;  %vm410_vm1 = vcmask 1040384  }
  0x15   : > { %367 = vmatpush.msra.mxu0 %v346_v0  ;;  %v354_v3 = vld [vmem:[%s3420_s1 + $0xb8] sm:$0xff]  ;;  %v343_v4 = vld [vmem:[%s3420_s1 + $0x60] sm:$0xff]  ;;  %v353_v5 = vld [vmem:[%s3420_s1 + $0xb0] sm:$0xff]  ;;  %vm478_vm2 = vcmask 261120   ;;  %vm738_vm3 = vcmask 130048   ;;  %vm864_vm4 = vcmask 1044480   ;;  %p2485_p12 = pnand %p2484_p11, %p2620_p5  ;;  %p2490_p2 = por %p2489_p1, %p2488_p0 }
  0x16   : > { %395 = vmatpush.msra.mxu1 %v354_v3  ;;  %s2388_s22 = sshll.u32 %s326_s27, 3  ;;  %v352_v6 = vld [vmem:[%s3420_s1 + $0xa8] sm:$0xff]  ;;  %v342_v7 = vld [vmem:[%s3420_s1 + $0x58] sm:$0xff]  ;;  %v351_v8 = vld [vmem:[%s3420_s1 + $0xa0] sm:$0xff]  ;;  %vm860_vm5 = vcmask 39936   ;;  %vm843_vm6 = vcmask 36864  }
  0x17   : > { %368 = vmatpush.msra.mxu0 %v345_v1  ;;  %s329_s28 = scalar_lea.vmem %s3419_s0, %s2388_s22  ;;  %v341_v10 = vld [vmem:[%s3420_s1 + $0x50] sm:$0xff]  ;;  %v340_v11 = vld [vmem:[%s3420_s1 + $0x48] sm:$0xff]  ;;  %v350_v12 = vld [vmem:[%s3420_s1 + $0x98] sm:$0xff]  ;;  %vm970_vm7 = vcmask 64512   ;;  %vm1111_vm8 = vcmask 258048   ;;  %s323_s22 = sand.u32 1, %s2521_s10  }
  0x18   : > { %396 = vmatpush.msra.mxu1 %v353_v5  ;;  %v330_v9 = vld [vmem:[%s329_s28] sm:$0xff]  ;;  %v349_v13 = vld [vmem:[%s3420_s1 + $0x90] sm:$0xff]  ;;  %v348_v15 = vld [vmem:[%s3420_s1 + $0x88] sm:$0xff]  ;;  %s324_s29 = scalar_lea.vmem [#allocation2], %s323_s22  ;;  %s2098_s27 = scalar_lea.sflag [#allocation3], %s323_s22 }
  0x19   : > { %369 = vmatpush.msra.mxu0 %v344_v2  ;;  %357 = vst [vmem:[#allocation1] ss:$2 sm:$0xff] %v330_v9  ;;  %v339_v14 = vld [vmem:[%s3420_s1 + $0x40] sm:$0xff]  ;;  %v338_v16 = vld [vmem:[%s3420_s1 + $0x38] sm:$0xff]  ;;  %v337_v18 = vld [vmem:[%s3420_s1 + $0x30] sm:$0xff]  ;;  %s2108_s14 = sshll.u32 %s324_s29, 4  ;;  %p2486_p13 = pneg %p2485_p12  ;;  %s2109_s14 = int_to_ptr.vmem [resolvable:$true] %s2108_s14 }
  0x1a   : > { %397 = vmatpush.msra.mxu1 %v352_v6  ;;  %v347_v17 = vld [vmem:[%s3420_s1 + $0x80] sm:$0xff]  ;;  %v336_v20 = vld [vmem:[%s3420_s1 + $0x28] sm:$0xff]  ;;  %v334_v22 = vld [vmem:[%s3420_s1 + $0x18] sm:$0xff] }
  0x1b   : > { %370 = vmatpush.msra.mxu0 %v343_v4  ;;  %v335_v21 = vld [vmem:[%s3420_s1 + $0x20] sm:$0xff]  ;;  %v333_v23 = vld [vmem:[%s3420_s1 + $0x10] sm:$0xff]  ;;  %v332_v24 = vld [vmem:[%s3420_s1 + $0x8] sm:$0xff]  ;;  %p2491_p3 = pnand %p2490_p2, %p2486_p13 }
  0x1c   : > { %398 = vmatpush.msra.mxu1 %v351_v8  ;;  %v331_v25 = vld [vmem:[%s3420_s1] sm:$0xff]  ;;  %v415_v27 = vld [vmem:[%s3422_s3 + $0x18] sm:$0xff]  ;;  %v414_v31 = vld [vmem:[%s3422_s3 + $0x10] sm:$0xff] }
  0x1d   : > { %371 = vmatpush.msra.mxu0 %v342_v7  ;;  %v419_v28 = vld [vmem:[%s3422_s3 + $0x38] sm:$0xff]  ;;  %494 = vmatpush.msra.mxu2 %v415_v27  ;;  %v418_v32 = vld [vmem:[%s3422_s3 + $0x30] sm:$0xff]  ;;  %v413_v35 = vld [vmem:[%s3422_s3 + $0x8] sm:$0xff] }
  0x1e   : > { %399 = vmatpush.msra.mxu1 %v350_v12  ;;  %v2175_v29 = vld [vmem:[%s3422_s3 + $0x98] sm:$0xff]  ;;  %514 = vmatpush.msra.mxu3 %v419_v28  ;;  %v2174_v33 = vld [vmem:[%s3422_s3 + $0x90] sm:$0xff]  ;;  %v417_v36 = vld [vmem:[%s3422_s3 + $0x28] sm:$0xff] }
  0x1f   : > { %372 = vmatpush.msra.mxu0 %v341_v10  ;;  %v456_v30 = vld [vmem:[%s3423_s4 + $0x58] sm:$0xff]  ;;  %495 = vmatpush.msra.mxu2 %v414_v31  ;;  %v455_v34 = vld [vmem:[%s3423_s4 + $0x50] sm:$0xff]  ;;  %v2173_v37 = vld [vmem:[%s3422_s3 + $0x88] sm:$0xff] }
  0x20   : > { %400 = vmatpush.msra.mxu1 %v349_v13  ;;  %v359_v19 = vld.sshfl [vmem:[#allocation1 + $0x8] sm:$0xff pattern:$0x75316420]  ;;  %v358_v26 = vld.sshfl [vmem:[#allocation1] sm:$0xff pattern:$0x75316420]  ;;  %515 = vmatpush.msra.mxu3 %v418_v32 }
  0x21   : > { %373 = vmatpush.msra.mxu0 %v340_v11  ;;  %496 = vmatpush.msra.mxu2 %v413_v35  ;;  %v454_v38 = vld [vmem:[%s3423_s4 + $0x48] sm:$0xff]  ;;  %v412_v39 = vld [vmem:[%s3422_s3] sm:$0xff]  ;;  %v423_v43 = vld [vmem:[%s3422_s3 + $0x58] sm:$0xff] }
  0x22   : > { %401 = vmatpush.msra.mxu1 %v348_v15  ;;  %516 = vmatpush.msra.mxu3 %v417_v36  ;;  %v416_v40 = vld [vmem:[%s3422_s3 + $0x20] sm:$0xff]  ;;  %v427_v44 = vld [vmem:[%s3422_s3 + $0x78] sm:$0xff]  ;;  %v422_v46 = vld [vmem:[%s3422_s3 + $0x50] sm:$0xff] }
  0x23   : > { %374 = vmatpush.msra.mxu0 %v339_v14  ;;  %v2172_v41 = vld [vmem:[%s3422_s3 + $0x80] sm:$0xff]  ;;  %497 = vmatpush.msra.mxu2 %v412_v39  ;;  %v2187_v45 = vld [vmem:[%s3422_s3 + $0xf8] sm:$0xff]  ;;  %v426_v47 = vld [vmem:[%s3422_s3 + $0x70] sm:$0xff] }
  0x24   : > { %402 = vmatpush.msra.mxu1 %v347_v17  ;;  %517 = vmatpush.msra.mxu3 %v416_v40  ;;  %v453_v42 = vld [vmem:[%s3423_s4 + $0x40] sm:$0xff]  ;;  %v2186_v48 = vld [vmem:[%s3422_s3 + $0xf0] sm:$0xff]  ;;  %v421_v49 = vld [vmem:[%s3422_s3 + $0x48] sm:$0xff] }
  0x25   : > { %375 = vmatpush.msra.mxu0 %v338_v16  ;;  %2171 = vmatmul.msk.f32.vlgmr.msra.gmra.mxu1 %vm364_vm0, %v359_v19  ;;  %v425_v50 = vld [vmem:[%s3422_s3 + $0x68] sm:$0xff]  ;;  %v420_v52 = vld [vmem:[%s3422_s3 + $0x40] sm:$0xff]  ;;  %v2179_v63 = vld [vmem:[%s3422_s3 + $0xb8] sm:$0xff] }
  0x26   : > { %582 = vmatpush.msrb.mxu1 %v2175_v29  ;;  %534 = vmatpush.msrb.mxu2 %v423_v43  ;;  %v2185_v51 = vld [vmem:[%s3422_s3 + $0xe8] sm:$0xff]  ;;  %v424_v53 = vld [vmem:[%s3422_s3 + $0x60] sm:$0xff]  ;;  %v2183_v0 = vld [vmem:[%s3422_s3 + $0xd8] sm:$0xff] }
  0x27   : > { %376 = vmatpush.msra.mxu0 %v337_v18  ;;  %554 = vmatpush.msrb.mxu3 %v427_v44  ;;  %v2184_v54 = vld [vmem:[%s3422_s3 + $0xe0] sm:$0xff]  ;;  %v460_v1 = vld [vmem:[%s3423_s4 + $0x78] sm:$0xff]  ;;  %v2178_v2 = vld [vmem:[%s3422_s3 + $0xb0] sm:$0xff] }
  0x28   : > { %583 = vmatpush.msrb.mxu1 %v2174_v33  ;;  %535 = vmatpush.msrb.mxu2 %v422_v46  ;;  %v355_v55 = vld [vmem:[%s3421_s2] sm:$0x1f]  ;;  %v2182_v3 = vld [vmem:[%s3422_s3 + $0xd0] sm:$0xff]  ;;  %v2177_v5 = vld [vmem:[%s3422_s3 + $0xa8] sm:$0xff] }
  0x29   : > { %377 = vmatpush.msra.mxu0 %v336_v20  ;;  %555 = vmatpush.msrb.mxu3 %v426_v47  ;;  %v362_v56 = vrot.slane %v355_v55, 1  ;;  %v459_v4 = vld [vmem:[%s3423_s4 + $0x70] sm:$0xff]  ;;  %v2181_v6 = vld [vmem:[%s3422_s3 + $0xc8] sm:$0xff]  ;;  %v2176_v8 = vld [vmem:[%s3422_s3 + $0xa0] sm:$0xff] }
  0x2a   : > { %584 = vmatpush.msrb.mxu1 %v2173_v37  ;;  %536 = vmatpush.msrb.mxu2 %v421_v49  ;;  %v458_v7 = vld [vmem:[%s3423_s4 + $0x68] sm:$0xff]  ;;  %v2180_v9 = vld [vmem:[%s3422_s3 + $0xc0] sm:$0xff]  ;;  %v448_v11 = vld [vmem:[%s3423_s4 + $0x18] sm:$0xff] }
  0x2b   : > { %378 = vmatpush.msra.mxu0 %v335_v21  ;;  %556 = vmatpush.msrb.mxu3 %v425_v50  ;;  %v457_v10 = vld [vmem:[%s3423_s4 + $0x60] sm:$0xff]  ;;  %v452_v12 = vld [vmem:[%s3423_s4 + $0x38] sm:$0xff]  ;;  %v447_v13 = vld [vmem:[%s3423_s4 + $0x10] sm:$0xff] }
  0x2c   : > { %585 = vmatpush.msrb.mxu1 %v2172_v41  ;;  %537 = vmatpush.msrb.mxu2 %v420_v52  ;;  %v451_v14 = vld [vmem:[%s3423_s4 + $0x30] sm:$0xff]  ;;  %v446_v15 = vld [vmem:[%s3423_s4 + $0x8] sm:$0xff]  ;;  %v445_v17 = vld [vmem:[%s3423_s4] sm:$0xff] }
  0x2d   : > { %379 = vmatpush.msra.mxu0 %v334_v22  ;;  %557 = vmatpush.msrb.mxu3 %v424_v53  ;;  %v450_v16 = vld [vmem:[%s3423_s4 + $0x28] sm:$0xff]  ;;  %v449_v18 = vld [vmem:[%s3423_s4 + $0x20] sm:$0xff] }
  0x2e   : > { %642 = vmatpush.msra.mxu1 %v2187_v45 }
  0x2f   : > { %380 = vmatpush.msra.mxu0 %v333_v23 }
  0x30   : > { %643 = vmatpush.msra.mxu1 %v2186_v48 }
  0x31   : > { %381 = vmatpush.msra.mxu0 %v332_v24 }
  0x32   : > { %644 = vmatpush.msra.mxu1 %v2185_v51 }
  0x33   : > { %382 = vmatpush.msra.mxu0 %v331_v25 }
  0x34   : > { %383 = vmatmul.f32.vlgmr.msra.gmra.mxu0 %v358_v26  ;;  %645 = vmatpush.msra.mxu1 %v2184_v54 }
  0x35   : > { %710 = vmatpush.msrb.mxu0 %v456_v30 }
  0x37   : > { %711 = vmatpush.msrb.mxu0 %v455_v34 }
  0x39   : > { %712 = vmatpush.msrb.mxu0 %v454_v38 }
  0x3b   : > { %713 = vmatpush.msrb.mxu0 %v453_v42 }
  0xa2   : > { %v404_v58 = vpop.f32.mrf.mxu1 }
  0xb1   : > { %v384_v57 = vpop.f32.mrf.mxu0 }
  0xb2   : > { %v385_v59 = vadd.f32 %v384_v57, %v362_v56  ;;  %v2199_v56 = vld [vmem:[%s3423_s4 + $0xd8] sm:$0xff]  ;;  %v2190_v57 = vld [vmem:[%s3423_s4 + $0x90] sm:$0xff] }
  0xb4   : > { %v405_v60 = vadd.f32 %v404_v58, %v385_v59  ;;  %v2189_v58 = vld [vmem:[%s3423_s4 + $0x88] sm:$0xff]  ;;  %v2198_v59 = vld [vmem:[%s3423_s4 + $0xd0] sm:$0xff] }
  0xb6   : > { %v408_v61 = vrot.slane %v405_v60, 7  ;;  %v2188_v60 = vld [vmem:[%s3423_s4 + $0x80] sm:$0xff] }
  0xb8   : > { %v2795_v62 = vsel %vm410_vm1, %v355_v55, %v408_v61  ;;  %v2191_v55 = vld [vmem:[%s3423_s4 + $0x98] sm:$0xff]  ;;  %vm2043_vm1 = vcmask 253952  }
  0xb9   : > { %2204 = vmatmul.msk.f32.vlgmr.msra.gmra.mxu2 %vm478_vm2, %v2795_v62  ;;  %2205 = vmatmul.msk.f32.vlgmr.msra.gmra.mxu3 %vm478_vm2, %v2795_v62  ;;  %v2203_v61 = vld [vmem:[%s3423_s4 + $0xf8] sm:$0xff] }
  0xba   : > { %2208 = vmatmul.msk.f32.vlgmr.msrb.gmra.mxu1 %vm478_vm2, %v2795_v62  ;;  %2214 = vmatmul.msk.f32.vlgmr.msrb.gmra.mxu0 %vm478_vm2, %v2795_v62 }
  0xbb   : > { %602 = vmatpush.msra.mxu2 %v2179_v63  ;;  %622 = vmatpush.msra.mxu3 %v2183_v0  ;;  %v2197_v63 = vld [vmem:[%s3423_s4 + $0xc8] sm:$0xff]  ;;  %v2202_v0 = vld [vmem:[%s3423_s4 + $0xf0] sm:$0xff] }
  0xbc   : > { %730 = vmatpush.msrb.mxu1 %v460_v1  ;;  %v2195_v1 = vld [vmem:[%s3423_s4 + $0xb8] sm:$0xff] }
  0xbd   : > { %603 = vmatpush.msra.mxu2 %v2178_v2  ;;  %623 = vmatpush.msra.mxu3 %v2182_v3  ;;  %v2196_v2 = vld [vmem:[%s3423_s4 + $0xc0] sm:$0xff]  ;;  %v2201_v3 = vld [vmem:[%s3423_s4 + $0xe8] sm:$0xff] }
  0xbe   : > { %731 = vmatpush.msrb.mxu1 %v459_v4  ;;  %v2194_v4 = vld [vmem:[%s3423_s4 + $0xb0] sm:$0xff] }
  0xbf   : > { %604 = vmatpush.msra.mxu2 %v2177_v5  ;;  %624 = vmatpush.msra.mxu3 %v2181_v6  ;;  %v2200_v5 = vld [vmem:[%s3423_s4 + $0xe0] sm:$0xff]  ;;  %v2193_v6 = vld [vmem:[%s3423_s4 + $0xa8] sm:$0xff] }
  0xc0   : > { %732 = vmatpush.msrb.mxu1 %v458_v7  ;;  %v2192_v7 = vld [vmem:[%s3423_s4 + $0xa0] sm:$0xff] }
  0xc1   : > { %2206 = vmatmul.msk.f32.vlgmr.msrb.gmra.mxu2 %vm478_vm2, %v2795_v62  ;;  %2207 = vmatmul.msk.f32.vlgmr.msrb.gmra.mxu3 %vm478_vm2, %v2795_v62 }
  0xc2   : > { %2211 = vmatmul.msk.f32.vlgmr.msra.gmra.mxu1 %vm478_vm2, %v2795_v62  ;;  %605 = vmatpush.msra.mxu2 %v2176_v8 }
  0xc3   : > { %625 = vmatpush.msra.mxu3 %v2180_v9  ;;  %733 = vmatpush.msrb.mxu1 %v457_v10 }
  0xc4   : > { %670 = vmatpush.msrb.mxu2 %v448_v11 }
  0xc5   : > { %690 = vmatpush.msrb.mxu3 %v452_v12 }
  0xc6   : > { %671 = vmatpush.msrb.mxu2 %v447_v13 }
  0xc7   : > { %691 = vmatpush.msrb.mxu3 %v451_v14 }
  0xc8   : > { %672 = vmatpush.msrb.mxu2 %v446_v15 }
  0xc9   : > { %692 = vmatpush.msrb.mxu3 %v450_v16  ;;  %2209 = vmatmul.msk.f32.vlgmr.msra.gmra.mxu2 %vm478_vm2, %v2795_v62 }
  0xca   : > { %2210 = vmatmul.msk.f32.vlgmr.msra.gmra.mxu3 %vm478_vm2, %v2795_v62  ;;  %2215 = vmatmul.msk.f32.vlgmr.msrb.gmra.mxu1 %vm478_vm2, %v2795_v62 }
  0xcb   : > { %673 = vmatpush.msrb.mxu2 %v445_v17  ;;  %693 = vmatpush.msrb.mxu3 %v449_v18 }
  0xd1   : > { %2212 = vmatmul.msk.f32.vlgmr.msrb.gmra.mxu2 %vm478_vm2, %v2795_v62 }
  0xd2   : > { %2213 = vmatmul.msk.f32.vlgmr.msrb.gmra.mxu3 %vm478_vm2, %v2795_v62 }
 0x137   : > { %v587_v19 = vpop.f32.mrf.mxu1  ;;  %v715_v42 = vpop.f32.mrf.mxu0 }
 0x138   : > { %v650_v20 = vmax.f32 %v587_v19, 0.0 }
 0x13a   : > { %v654_v21 = vadd.f32 0.001, %v650_v20 }
 0x13c   : > { %2216 = vmatpush.xpose.msk.msra.mxu2 %vm738_vm3, %v654_v21  ;;  %v499_v22 = vpop.f32.mrf.mxu2  ;;  %v519_v23 = vpop.f32.mrf.mxu3 }
 0x13d   : > { %v562_v24 = vmax.f32 %v499_v22, 0.0  ;;  %v563_v38 = vmax.f32 %v519_v23, 0.0 }
 0x13f   : > { %v566_v25 = vadd.f32 0.001, %v562_v24  ;;  %v647_v26 = vpop.f32.mrf.mxu1  ;;  %v567_v43 = vadd.f32 0.001, %v563_v38 }
 0x140   : > { %v653_v27 = vmax.f32 %v647_v26, 0.0 }
 0x141   : > { %2217 = vmatmul.msk.f32.vlgmr.msra.gmra.mxu2 %vm738_vm3, %v566_v25 }
 0x142   : > { %v657_v28 = vadd.f32 0.001, %v653_v27 }
 0x144   : > { %2222 = vmatpush.xpose.msk.msra.mxu1 %vm738_vm3, %v657_v28  ;;  %v539_v29 = vpop.f32.mrf.mxu2  ;;  %v559_v30 = vpop.f32.mrf.mxu3 }
 0x145   : > { %v565_v31 = vmax.f32 %v559_v30, 0.0  ;;  %v564_v39 = vmax.f32 %v539_v29, 0.0 }
 0x147   : > { %v569_v32 = vadd.f32 0.001, %v565_v31  ;;  %v735_v33 = vpop.f32.mrf.mxu1  ;;  %v568_v44 = vadd.f32 0.001, %v564_v39  ;;  %v2531_v39 = vmov 32.0  }
 0x148   : > { %2230 = vmatpush.msk.msrb.mxu1 %vm864_vm4, %v735_v33 }
 0x149   : > { %2223 = vmatmul.msk.f32.vlgmr.msra.gmra.mxu1 %vm738_vm3, %v569_v32 }
 0x14a   : > { %2247 = vmatpush.xpose.msk.msra.mxu1 %vm970_vm7, %v2203_v61 }
 0x14c   : > { %v607_v34 = vpop.f32.mrf.mxu2 }
 0x14d   : > { %v627_v35 = vpop.f32.mrf.mxu3  ;;  %v651_v36 = vmax.f32 %v607_v34, 0.0 }
 0x14e   : > { %v652_v37 = vmax.f32 %v627_v35, 0.0  ;;  %2248 = vmatpush.xpose.msk.msra.mxu1 %vm970_vm7, %v2202_v0  ;;  %v2429_v35 = vld [vmem:[%s3426_s7] ss:$0 sm:$0xff]  ;;  %v2430_v0 = vld [vmem:[%s3426_s7 + $0x1] ss:$0 sm:$0xff] }
 0x14f   : > { %v655_v40 = vadd.f32 0.001, %v651_v36 }
 0x150   : > { %v656_v41 = vadd.f32 0.001, %v652_v37 }
 0x151   : > { %2218 = vmatpush.xpose.msk.msra.mxu3 %vm738_vm3, %v655_v40 }
 0x152   : > { %2220 = vmatpush.xpose.msk.msra.mxu0 %vm738_vm3, %v656_v41  ;;  %2249 = vmatpush.xpose.msk.msra.mxu1 %vm970_vm7, %v2201_v3  ;;  %v2431_v3 = vld [vmem:[%s3426_s7 + $0x2] ss:$0 sm:$0xff] }
 0x154   : > { %v675_v45 = vpop.f32.mrf.mxu2  ;;  %2219 = vmatmul.msk.f32.vlgmr.msra.gmra.mxu3 %vm738_vm3, %v567_v43 }
 0x155   : > { %v695_v46 = vpop.f32.mrf.mxu3  ;;  %2221 = vmatmul.msk.f32.vlgmr.msra.gmra.mxu0 %vm738_vm3, %v568_v44  ;;  %2224 = vmatpush.msk.msrb.mxu2 %vm864_vm4, %v675_v45 }
 0x156   : > { %2228 = vmatpush.msk.msrb.mxu0 %vm864_vm4, %v715_v42  ;;  %2226 = vmatpush.msk.msrb.mxu3 %vm864_vm4, %v695_v46 }
 0x157   : > { %2232 = vmatpush.xpose.msk.msra.mxu2 %vm970_vm7, %v2191_v55  ;;  %2250 = vmatpush.xpose.msk.msra.mxu1 %vm970_vm7, %v2200_v5 }
 0x158   : > { %2242 = vmatpush.xpose.msk.msra.mxu0 %vm970_vm7, %v2199_v56  ;;  %2237 = vmatpush.xpose.msk.msra.mxu3 %vm970_vm7, %v2195_v1 }
 0x15b   : > { %2233 = vmatpush.xpose.msk.msra.mxu2 %vm970_vm7, %v2190_v57 }
 0x15c   : > { %2243 = vmatpush.xpose.msk.msra.mxu0 %vm970_vm7, %v2198_v59  ;;  %2238 = vmatpush.xpose.msk.msra.mxu3 %vm970_vm7, %v2194_v4 }
 0x15f   : > { %2234 = vmatpush.xpose.msk.msra.mxu2 %vm970_vm7, %v2189_v58 }
 0x160   : > { %2244 = vmatpush.xpose.msk.msra.mxu0 %vm970_vm7, %v2197_v63  ;;  %2239 = vmatpush.xpose.msk.msra.mxu3 %vm970_vm7, %v2193_v6  ;;  %v1203_v6 = vld [vmem:[%s3425_s6 + $0x38] sm:$0xff] }
 0x163   : > { %2235 = vmatpush.xpose.msk.msra.mxu2 %vm970_vm7, %v2188_v60 }
 0x164   : > { %2245 = vmatpush.xpose.msk.msra.mxu0 %vm970_vm7, %v2196_v2  ;;  %2240 = vmatpush.xpose.msk.msra.mxu3 %vm970_vm7, %v2192_v7  ;;  %v1202_v7 = vld [vmem:[%s3425_s6 + $0x30] sm:$0xff] }
 0x1c4   : > { %v762_v47 = vpop.f32.mrf.mxu2 }
 0x1c5   : > { %2225 = vmatmul.msk.f32.vlgmr.msrb.gmra.mxu2 %vm860_vm5, %v762_v47  ;;  %v844_v48 = vsel %vm843_vm6, %v762_v47, 0.0 }
 0x1c6   : > { %v840_v49 = vpop.f32.mrf.mxu1  ;;  %845 = vadd.xlane.f32.xlu0 %v844_v48 }
 0x1c7   : > { %2231 = vmatmul.msk.f32.vlgmr.msrb.gmra.mxu1 %vm860_vm5, %v840_v49  ;;  %v853_v54 = vsel %vm843_vm6, %v840_v49, 0.0 }
 0x1d2   : > { %v814_v50 = vpop.f32.mrf.mxu0 }
 0x1d3   : > { %2229 = vmatmul.msk.f32.vlgmr.msrb.gmra.mxu0 %vm860_vm5, %v814_v50  ;;  %v850_v51 = vsel %vm843_vm6, %v814_v50, 0.0  ;;  %v1161_v50 = vld [vmem:[%s3424_s5 + $0x18] sm:$0xff] }
 0x1d4   : > { %851 = vadd.xlane.f32.xlu1 %v850_v51  ;;  %1179 = vmatpush.msrb.mxu2 %v1161_v50  ;;  %v1160_v51 = vld [vmem:[%s3424_s5 + $0x10] sm:$0xff] }
 0x1d5   : > { %v2296_v50 = vld [vmem:[%s3423_s4 + $0x150] sm:$0xff] }
 0x1d6   : > { %1180 = vmatpush.msrb.mxu2 %v1160_v51  ;;  %v2267_v51 = vld [vmem:[%s3422_s3 + $0x168] sm:$0xff] }
 0x1d7   : > { %v788_v52 = vpop.f32.mrf.mxu3 }
 0x1d8   : > { %2227 = vmatmul.msk.f32.vlgmr.msrb.gmra.mxu3 %vm860_vm5, %v788_v52  ;;  %v847_v53 = vsel %vm843_vm6, %v788_v52, 0.0  ;;  %v1159_v52 = vld [vmem:[%s3424_s5 + $0x8] sm:$0xff] }
 0x1d9   : > { %848 = vadd.xlane.f32.xlu0 %v847_v53  ;;  %v1158_v53 = vld [vmem:[%s3424_s5] sm:$0xff]  ;;  %1181 = vmatpush.msrb.mxu2 %v1159_v52  ;;  %v2271_v52 = vld [vmem:[%s3422_s3 + $0x188] sm:$0xff] }
 0x1da   : > { %1215 = vmatpush.msrb.mxu3 %v1203_v6  ;;  %v2287_v6 = vld [vmem:[%s3423_s4 + $0x108] sm:$0xff] }
 0x1db   : > { %1182 = vmatpush.msrb.mxu2 %v1158_v53  ;;  %v2275_v53 = vld [vmem:[%s3422_s3 + $0x1a8] sm:$0xff] }
 0x1dc   : > { %854 = vadd.xlane.f32.xlu1 %v853_v54  ;;  %1216 = vmatpush.msrb.mxu3 %v1202_v7  ;;  %v2291_v7 = vld [vmem:[%s3423_s4 + $0x128] sm:$0xff] }
 0x239   : > { %v846_v8 = vpop.xlane.xlu0 %845 }
 0x23a   : > { %2439 = vrcp.f32 %v846_v8  ;;  %v1201_v8 = vld [vmem:[%s3425_s6 + $0x28] sm:$0xff] }
 0x23b   : > { %1217 = vmatpush.msrb.mxu3 %v1201_v8  ;;  %v2282_v8 = vld [vmem:[%s3422_s3 + $0x1e0] sm:$0xff] }
 0x240   : > { %v2440_v10 = vpop.eup %2439 }
 0x244   : > { %v963_v19 = vpop.f32.mrf.mxu1 }
 0x247   : > { %v852_v9 = vpop.xlane.xlu1 %851 }
 0x248   : > { %v885_v11 = vpop.f32.mrf.mxu2  ;;  %2441 = vrcp.f32 %v852_v9  ;;  %v1200_v9 = vld [vmem:[%s3425_s6 + $0x20] sm:$0xff] }
 0x249   : > { %v966_v12 = vmul.f32 %v2440_v10, %v885_v11  ;;  %v1199_v10 = vld [vmem:[%s3425_s6 + $0x18] sm:$0xff]  ;;  %1218 = vmatpush.msrb.mxu3 %v1200_v9  ;;  %v1198_v11 = vld [vmem:[%s3425_s6 + $0x10] sm:$0xff]  ;;  %v2286_v9 = vld [vmem:[%s3423_s4 + $0x100] sm:$0xff] }
 0x24b   : > { %2236 = vmatmul.msk.f32.vlgmr.msra.gmra.mxu2 %vm970_vm7, %v966_v12  ;;  %1219 = vmatpush.msrb.mxu3 %v1199_v10  ;;  %v1197_v12 = vld [vmem:[%s3425_s6 + $0x8] sm:$0xff]  ;;  %v2290_v10 = vld [vmem:[%s3423_s4 + $0x120] sm:$0xff] }
 0x24c   : > { %v849_v17 = vpop.xlane.xlu0 %848 }
 0x24d   : > { %1220 = vmatpush.msrb.mxu3 %v1198_v11  ;;  %v2301_v11 = vld [vmem:[%s3423_s4 + $0x178] sm:$0xff] }
 0x24e   : > { %v2442_v14 = vpop.eup %2441 }
 0x24f   : > { %v855_v13 = vpop.xlane.xlu1 %854  ;;  %1221 = vmatpush.msrb.mxu3 %v1197_v12  ;;  %v2300_v12 = vld [vmem:[%s3423_s4 + $0x170] sm:$0xff] }
 0x250   : > { %2443 = vrcp.f32 %v855_v13  ;;  %v937_v15 = vpop.f32.mrf.mxu0  ;;  %v1196_v13 = vld [vmem:[%s3425_s6] sm:$0xff] }
 0x251   : > { %v968_v16 = vmul.f32 %v2442_v14, %v937_v15  ;;  %2445 = vrcp.f32 %v849_v17  ;;  %1222 = vmatpush.msrb.mxu3 %v1196_v13  ;;  %v2257_v14 = vld [vmem:[%s3422_s3 + $0x118] sm:$0xff]  ;;  %v2299_v13 = vld [vmem:[%s3423_s4 + $0x168] sm:$0xff] }
 0x252   : > { %2447 = vrcp.f32 %v2531_v39  ;;  %v2261_v15 = vld [vmem:[%s3422_s3 + $0x138] sm:$0xff]  ;;  %1314 = vmatpush.msrb.mxu0 %v2257_v14  ;;  %v2254_v39 = vld [vmem:[%s3422_s3 + $0x100] sm:$0xff] }
 0x253   : > { %2246 = vmatmul.msk.f32.vlgmr.msra.gmra.mxu0 %vm970_vm7, %v968_v16  ;;  %v2265_v16 = vld [vmem:[%s3422_s3 + $0x158] sm:$0xff]  ;;  %1334 = vmatpush.msrb.mxu1 %v2261_v15  ;;  %v2298_v14 = vld [vmem:[%s3423_s4 + $0x160] sm:$0xff] }
 0x254   : > { %v2281_v17 = vld [vmem:[%s3422_s3 + $0x1d8] sm:$0xff]  ;;  %1354 = vmatpush.msra.mxu2 %v2265_v16 }
 0x256   : > { %v2444_v18 = vpop.eup %2443 }
 0x257   : > { %v969_v20 = vmul.f32 %v2444_v18, %v963_v19  ;;  %v2446_v21 = vpop.eup %2445  ;;  %v2432_v18 = vld [vmem:[%s3426_s7 + $0x3] ss:$0 sm:$0xff] }
 0x258   : > { %v2448_v40 = vpop.eup %2447 }
 0x259   : > { %2251 = vmatmul.msk.f32.vlgmr.msra.gmra.mxu1 %vm970_vm7, %v969_v20  ;;  %v1129_v41 = vmul.f32 32.0, %v2448_v40  ;;  %vm1133_vm9 = vweird.f32 %v2448_v40 }
 0x25b   : > { %v911_v22 = vpop.f32.mrf.mxu3  ;;  %v1130_v42 = vsub.f32 1.0, %v1129_v41  ;;  %v2262_v41 = vld [vmem:[%s3422_s3 + $0x140] sm:$0xff] }
 0x25c   : > { %v967_v23 = vmul.f32 %v2446_v21, %v911_v22 }
 0x25d   : > { %v1131_v43 = vmul.f32 %v2448_v40, %v1130_v42  ;;  %v2278_v42 = vld [vmem:[%s3422_s3 + $0x1c0] sm:$0xff] }
 0x25e   : > { %2241 = vmatmul.msk.f32.vlgmr.msra.gmra.mxu3 %vm970_vm7, %v967_v23 }
 0x25f   : > { %v1132_v44 = vadd.f32 %v2448_v40, %v1131_v43  ;;  %1442 = vmatpush.msra.mxu3 %v2281_v17  ;;  %v2269_v43 = vld [vmem:[%s3422_s3 + $0x178] sm:$0xff] }
 0x261   : > { %v2981_v45 = vsel %vm1133_vm9, %v2448_v40, %v1132_v44  ;;  %v2258_v40 = vld [vmem:[%s3422_s3 + $0x120] sm:$0xff]  ;;  %v2273_v44 = vld [vmem:[%s3422_s3 + $0x198] sm:$0xff] }
 0x2ce   : > { %v1003_v24 = vpop.f32.mrf.mxu2 }
 0x2cf   : > { %v1112_v27 = vsel %vm1111_vm8, %v1003_v24, 0.0 }
 0x2d0   : > { %v1073_v25 = vpop.f32.mrf.mxu0 }
 0x2d1   : > { %v1115_v31 = vsel %vm1111_vm8, %v1073_v25, 0.0 }
 0x2d6   : > { %v1108_v29 = vpop.f32.mrf.mxu1 }
 0x2d7   : > { %v1117_v33 = vsel %vm1111_vm8, %v1108_v29, 0.0 }
 0x2e1   : > { %v1038_v26 = vpop.f32.mrf.mxu3 }
 0x2e2   : > { %v1113_v28 = vsel %vm1111_vm8, %v1038_v26, 0.0 }
 0x2e3   : > { %v1114_v30 = vadd.f32 %v1113_v28, %v1112_v27 }
 0x2e5   : > { %v1116_v32 = vadd.f32 %v1115_v31, %v1114_v30  ;;  %v2256_v30 = vld [vmem:[%s3422_s3 + $0x110] sm:$0xff] }
 0x2e6   : > { %v2260_v31 = vld [vmem:[%s3422_s3 + $0x130] sm:$0xff]  ;;  %1315 = vmatpush.msrb.mxu0 %v2256_v30 }
 0x2e7   : > { %v1118_v34 = vadd.f32 %v1117_v33, %v1116_v32  ;;  %v2264_v32 = vld [vmem:[%s3422_s3 + $0x150] sm:$0xff]  ;;  %1335 = vmatpush.msrb.mxu1 %v2260_v31 }
 0x2e8   : > { %v2280_v33 = vld [vmem:[%s3422_s3 + $0x1d0] sm:$0xff]  ;;  %1355 = vmatpush.msra.mxu2 %v2264_v32 }
 0x2e9   : > { %v1119_v36 = vadd.f32 %v1118_v34, %v2795_v62  ;;  %1443 = vmatpush.msra.mxu3 %v2280_v33  ;;  %v2255_v34 = vld [vmem:[%s3422_s3 + $0x108] sm:$0xff] }
 0x2ea   : > { %1316 = vmatpush.msrb.mxu0 %v2255_v34 }
 0x2eb   : > { %v2977_v37 = vadd.f32 %v2429_v35, %v1119_v36  ;;  %v2259_v35 = vld [vmem:[%s3422_s3 + $0x128] sm:$0xff] }
 0x2ec   : > { %v2263_v36 = vld [vmem:[%s3422_s3 + $0x148] sm:$0xff]  ;;  %1336 = vmatpush.msrb.mxu1 %v2259_v35  ;;  %1317 = vmatpush.msrb.mxu0 %v2254_v39 }
 0x2ed   : > { %v1125_v38 = vsel %vm1111_vm8, %v2977_v37, 0.0  ;;  %1356 = vmatpush.msra.mxu2 %v2263_v36 }
 0x2ee   : > { %1126 = vadd.xlane.f32.xlu2 %v1125_v38  ;;  %v2279_v38 = vld [vmem:[%s3422_s3 + $0x1c8] sm:$0xff]  ;;  %1337 = vmatpush.msrb.mxu1 %v2258_v40 }
 0x2ef   : > { %1444 = vmatpush.msra.mxu3 %v2279_v38  ;;  %1357 = vmatpush.msra.mxu2 %v2262_v41 }
 0x2f0   : > { %1374 = vmatpush.msra.mxu0 %v2269_v43  ;;  %1402 = vmatpush.msra.mxu1 %v2273_v44  ;;  %v2305_v44 = vld [vmem:[%s3423_s4 + $0x198] sm:$0xff] }
 0x2f1   : > { %1445 = vmatpush.msra.mxu3 %v2278_v42 }
 0x361   : > { %v1127_v46 = vpop.xlane.xlu2 %1126 }
 0x362   : > { %v1135_v47 = vmul.f32 %v2981_v45, %v1127_v46  ;;  %v2277_v46 = vld [vmem:[%s3422_s3 + $0x1b8] sm:$0xff] }
 0x364   : > { %v1136_v62 = vsub.f32 %v2977_v37, %v1135_v47  ;;  %v2297_v47 = vld [vmem:[%s3423_s4 + $0x158] sm:$0xff] }
 0x366   : > { %v1137_v48 = vmul.f32 %v1136_v62, %v1136_v62 }
 0x368   : > { %v1138_v49 = vsel %vm1111_vm8, %v1137_v48, 0.0  ;;  %v2272_v48 = vld [vmem:[%s3422_s3 + $0x190] sm:$0xff] }
 0x369   : > { %1139 = vadd.xlane.f32.xlu2 %v1138_v49  ;;  %v2276_v49 = vld [vmem:[%s3422_s3 + $0x1b0] sm:$0xff]  ;;  %1403 = vmatpush.msra.mxu1 %v2272_v48 }
 0x36b   : > { %1404 = vmatpush.msra.mxu1 %v2271_v52 }
 0x3dc   : > { %v1140_v54 = vpop.xlane.xlu2 %1139 }
 0x3dd   : > { %v1141_v55 = vmul.f32 %v1140_v54, %v2981_v45  ;;  %v2295_v54 = vld [vmem:[%s3423_s4 + $0x148] sm:$0xff] }
 0x3df   : > { %v1142_v56 = vadd.f32 1e-05, %v1141_v55  ;;  %v2266_v55 = vld [vmem:[%s3422_s3 + $0x160] sm:$0xff] }
 0x3e1   : > { %2449 = vrsqrt.f32 %v1142_v56  ;;  %vm1149_vm11 = vweird.f32 %v1142_v56 }
 0x3e7   : > { %v2450_v57 = vpop.eup %2449 }
 0x3e8   : > { %v1144_v58 = vmul.f32 %v2450_v57, %v1142_v56  ;;  %vm1150_vm10 = vweird.f32 %v2450_v57  ;;  %v2270_v56 = vld [vmem:[%s3422_s3 + $0x180] sm:$0xff] }
 0x3e9   : > { %vm1151_vm12 = vmor %vm1149_vm11, %vm1150_vm10  ;;  %1405 = vmatpush.msra.mxu1 %v2270_v56  ;;  %v2302_v56 = vld [vmem:[%s3423_s4 + $0x180] sm:$0xff] }
 0x3ea   : > { %v1145_v59 = vmul.f32 %v2450_v57, %v1144_v58  ;;  %v2294_v58 = vld [vmem:[%s3423_s4 + $0x140] sm:$0xff] }
 0x3ec   : > { %v1146_v60 = vmul.f32 0.5, %v1145_v59  ;;  %v2433_v59 = vld [vmem:[%s3426_s7 + $0x4] ss:$0 sm:$0xff] }
 0x3ee   : > { %v1147_v61 = vsub.f32 1.5, %v1146_v60 }
 0x3f0   : > { %v1148_v63 = vmul.f32 %v2450_v57, %v1147_v61 }
 0x3f2   : > { %v1152_v1 = vsel %vm1151_vm12, %v2450_v57, %v1148_v63  ;;  %v2274_v57 = vld [vmem:[%s3422_s3 + $0x1a0] sm:$0xff] }
 0x3f3   : > { %v1153_v2 = vmul.f32 %v1152_v1, %v1136_v62  ;;  %v2268_v62 = vld [vmem:[%s3422_s3 + $0x170] sm:$0xff]  ;;  %v2289_v1 = vld [vmem:[%s3423_s4 + $0x118] sm:$0xff] }
 0x3f4   : > { %1375 = vmatpush.msra.mxu0 %v2268_v62 }
 0x3f5   : > { %v1155_v4 = vmul.f32 %v2430_v0, %v1153_v2  ;;  %v2285_v0 = vld [vmem:[%s3422_s3 + $0x1f8] sm:$0xff]  ;;  %v2284_v2 = vld [vmem:[%s3422_s3 + $0x1f0] sm:$0xff] }
 0x3f6   : > { %1376 = vmatpush.msra.mxu0 %v2267_v51 }
 0x3f7   : > { %v1157_v5 = vadd.f32 %v2431_v3, %v1155_v4  ;;  %v2288_v3 = vld [vmem:[%s3423_s4 + $0x110] sm:$0xff] }
 0x3f8   : > { %1377 = vmatpush.msra.mxu0 %v2266_v55  ;;  %v2292_v4 = vld [vmem:[%s3423_s4 + $0x130] sm:$0xff]  ;;  %v2313_v55 = vld [vmem:[%s3423_s4 + $0x1d8] sm:$0xff] }
 0x3f9   : > { %2252 = vmatmul.msk.f32.vlgmr.msrb.gmra.mxu2 %vm478_vm2, %v1157_v5  ;;  %v2283_v5 = vld [vmem:[%s3422_s3 + $0x1e8] sm:$0xff] }
 0x3fa   : > { %1422 = vmatpush.msrb.mxu2 %v2277_v46 }
 0x3fc   : > { %1423 = vmatpush.msrb.mxu2 %v2276_v49 }
 0x3fe   : > { %1424 = vmatpush.msrb.mxu2 %v2275_v53  ;;  %v2304_v53 = vld [vmem:[%s3423_s4 + $0x190] sm:$0xff] }
 0x400   : > { %1425 = vmatpush.msrb.mxu2 %v2274_v57  ;;  %v2312_v57 = vld [vmem:[%s3423_s4 + $0x1d0] sm:$0xff] }
 0x47c   : > { %v1184_v19 = vpop.f32.mrf.mxu2 }
 0x47d   : > { %v1185_v20 = vadd.f32 %v2432_v18, %v1184_v19 }
 0x47f   : > { %v1188_v21 = vmul.f32 0.044715, %v1185_v20  ;;  %v1187_v27 = vmul.f32 0.5, %v1185_v20 }
 0x481   : > { %v1189_v22 = vmul.f32 %v1188_v21, %v1185_v20 }
 0x483   : > { %v1190_v23 = vmul.f32 %v1189_v22, %v1185_v20 }
 0x485   : > { %v1191_v24 = vadd.f32 %v1190_v23, %v1185_v20 }
 0x487   : > { %v1192_v25 = vmul.f32 0.7978846, %v1191_v24 }
 0x489   : > { %2451 = vtanh.f32 %v1192_v25 }
 0x48f   : > { %v2452_v26 = vpop.eup %2451 }
 0x490   : > { %v1194_v28 = vadd.f32 1.0, %v2452_v26 }
 0x492   : > { %v1195_v29 = vmul.f32 %v1194_v28, %v1187_v27 }
 0x494   : > { %2253 = vmatmul.msk.f32.vlgmr.msrb.gmra.mxu3 %vm364_vm0, %v1195_v29 }
 0x495   : > { %1530 = vmatpush.msrb.mxu3 %v2297_v47 }
 0x497   : > { %1531 = vmatpush.msrb.mxu3 %v2296_v50 }
 0x499   : > { %1532 = vmatpush.msrb.mxu3 %v2295_v54  ;;  %v2303_v54 = vld [vmem:[%s3423_s4 + $0x188] sm:$0xff] }
 0x49b   : > { %1533 = vmatpush.msrb.mxu3 %v2294_v58  ;;  %v2309_v58 = vld [vmem:[%s3423_s4 + $0x1b8] sm:$0xff] }
 0x517   : > { %v1224_v60 = vpop.f32.mrf.mxu3 }
 0x518   : > { %v1227_v61 = vadd.f32 %v1224_v60, %v2977_v37  ;;  %v2293_v37 = vld [vmem:[%s3423_s4 + $0x138] sm:$0xff] }
 0x519   : > { %v2317_v60 = vld [vmem:[%s3423_s4 + $0x1f8] sm:$0xff] }
 0x51a   : > { %v3134_v63 = vadd.f32 %v2433_v59, %v1227_v61  ;;  %v2311_v59 = vld [vmem:[%s3423_s4 + $0x1c8] sm:$0xff]  ;;  %v2308_v61 = vld [vmem:[%s3423_s4 + $0x1b0] sm:$0xff] }
 0x51c   : > { %2318 = vmatmul.msk.f32.vlgmr.msrb.gmra.mxu0 %vm478_vm2, %v3134_v63  ;;  %2319 = vmatmul.msk.f32.vlgmr.msrb.gmra.mxu1 %vm478_vm2, %v3134_v63 }
 0x51d   : > { %2320 = vmatmul.msk.f32.vlgmr.msra.gmra.mxu2 %vm478_vm2, %v3134_v63  ;;  %2324 = vmatmul.msk.f32.vlgmr.msra.gmra.mxu3 %vm478_vm2, %v3134_v63 }
 0x51e   : > { %1462 = vmatpush.msrb.mxu0 %v2285_v0  ;;  %1490 = vmatpush.msrb.mxu1 %v2289_v1  ;;  %v2310_v0 = vld [vmem:[%s3423_s4 + $0x1c0] sm:$0xff]  ;;  %v2316_v1 = vld [vmem:[%s3423_s4 + $0x1f0] sm:$0xff] }
 0x51f   : > { %1510 = vmatpush.msra.mxu2 %v2293_v37  ;;  %v2307_v37 = vld [vmem:[%s3423_s4 + $0x1a8] sm:$0xff] }
 0x520   : > { %1463 = vmatpush.msrb.mxu0 %v2284_v2  ;;  %1491 = vmatpush.msrb.mxu1 %v2288_v3  ;;  %v2315_v2 = vld [vmem:[%s3423_s4 + $0x1e8] sm:$0xff]  ;;  %v2306_v3 = vld [vmem:[%s3423_s4 + $0x1a0] sm:$0xff] }
 0x521   : > { %1511 = vmatpush.msra.mxu2 %v2292_v4  ;;  %v2314_v4 = vld [vmem:[%s3423_s4 + $0x1e0] sm:$0xff] }
 0x522   : > { %1464 = vmatpush.msrb.mxu0 %v2283_v5  ;;  %1492 = vmatpush.msrb.mxu1 %v2287_v6 }
 0x523   : > { %1512 = vmatpush.msra.mxu2 %v2291_v7 }
 0x524   : > { %2321 = vmatmul.msk.f32.vlgmr.msra.gmra.mxu0 %vm478_vm2, %v3134_v63  ;;  %2322 = vmatmul.msk.f32.vlgmr.msra.gmra.mxu1 %vm478_vm2, %v3134_v63 }
 0x525   : > { %2323 = vmatmul.msk.f32.vlgmr.msrb.gmra.mxu2 %vm478_vm2, %v3134_v63  ;;  %2328 = vmatmul.msk.f32.vlgmr.msrb.gmra.mxu3 %vm478_vm2, %v3134_v63 }
 0x526   : > { %1465 = vmatpush.msrb.mxu0 %v2282_v8  ;;  %1493 = vmatpush.msrb.mxu1 %v2286_v9 }
 0x527   : > { %1513 = vmatpush.msra.mxu2 %v2290_v10 }
 0x528   : > { %1550 = vmatpush.msra.mxu0 %v2301_v11 }
 0x52a   : > { %1551 = vmatpush.msra.mxu0 %v2300_v12 }
 0x52c   : > { %1552 = vmatpush.msra.mxu0 %v2299_v13  ;;  %2326 = vmatmul.msk.f32.vlgmr.msrb.gmra.mxu1 %vm478_vm2, %v3134_v63 }
 0x52d   : > { %2325 = vmatmul.msk.f32.vlgmr.msrb.gmra.mxu0 %vm478_vm2, %v3134_v63  ;;  %2327 = vmatmul.msk.f32.vlgmr.msra.gmra.mxu2 %vm478_vm2, %v3134_v63 }
 0x52e   : > { %1553 = vmatpush.msra.mxu0 %v2298_v14 }
 0x535   : > { %2329 = vmatmul.msk.f32.vlgmr.msra.gmra.mxu0 %vm478_vm2, %v3134_v63 }
 0x599   : > { %v1319_v15 = vpop.f32.mrf.mxu0  ;;  %v1339_v16 = vpop.f32.mrf.mxu1 }
 0x59a   : > { %v1382_v24 = vmax.f32 %v1319_v15, 0.0  ;;  %v1383_v34 = vmax.f32 %v1339_v16, 0.0 }
 0x59c   : > { %v1386_v28 = vadd.f32 0.001, %v1382_v24  ;;  %v1387_v40 = vadd.f32 0.001, %v1383_v34 }
 0x5a0   : > { %v1359_v17 = vpop.f32.mrf.mxu2  ;;  %v1447_v18 = vpop.f32.mrf.mxu3 }
 0x5a1   : > { %v1472_v19 = vmax.f32 %v1447_v18, 0.0  ;;  %v1379_v20 = vpop.f32.mrf.mxu0  ;;  %v1407_v21 = vpop.f32.mrf.mxu1  ;;  %v1384_v22 = vmax.f32 %v1359_v17, 0.0 }
 0x5a2   : > { %v1470_v23 = vmax.f32 %v1407_v21, 0.0  ;;  %v1385_v36 = vmax.f32 %v1379_v20, 0.0 }
 0x5a3   : > { %v1476_v25 = vadd.f32 0.001, %v1472_v19  ;;  %v1388_v27 = vadd.f32 0.001, %v1384_v22 }
 0x5a4   : > { %v1474_v26 = vadd.f32 0.001, %v1470_v23  ;;  %v1389_v41 = vadd.f32 0.001, %v1385_v36 }
 0x5a5   : > { %2334 = vmatpush.xpose.msk.msra.mxu3 %vm738_vm3, %v1476_v25 }
 0x5a6   : > { %2330 = vmatpush.xpose.msk.msra.mxu1 %vm738_vm3, %v1474_v26 }
 0x5a8   : > { %v1427_v29 = vpop.f32.mrf.mxu2  ;;  %v1535_v30 = vpop.f32.mrf.mxu3  ;;  %2335 = vmatmul.msk.f32.vlgmr.msra.gmra.mxu3 %vm738_vm3, %v1388_v27 }
 0x5a9   : > { %v1471_v31 = vmax.f32 %v1427_v29, 0.0  ;;  %2342 = vmatpush.msk.msrb.mxu3 %vm864_vm4, %v1535_v30  ;;  %v1495_v33 = vpop.f32.mrf.mxu1  ;;  %2331 = vmatmul.msk.f32.vlgmr.msra.gmra.mxu1 %vm738_vm3, %v1386_v28 }
 0x5aa   : > { %v1467_v32 = vpop.f32.mrf.mxu0  ;;  %2338 = vmatpush.msk.msrb.mxu1 %vm864_vm4, %v1495_v33 }
 0x5ab   : > { %v1473_v35 = vmax.f32 %v1467_v32, 0.0  ;;  %v1475_v38 = vadd.f32 0.001, %v1471_v31  ;;  %2356 = vmatpush.xpose.msk.msra.mxu3 %vm970_vm7, %v2313_v55  ;;  %v2434_v32 = vld [vmem:[%s3426_s7 + $0x8] ss:$0 sm:$0xff] }
 0x5ac   : > { %2346 = vmatpush.xpose.msk.msra.mxu1 %vm970_vm7, %v2305_v44  ;;  %v2369_v44 = vld [vmem:[%s3424_s5 + $0x20] sm:$0xff] }
 0x5ad   : > { %v1477_v39 = vadd.f32 0.001, %v1473_v35  ;;  %2332 = vmatpush.xpose.msk.msrb.mxu2 %vm738_vm3, %v1475_v38 }
 0x5af   : > { %2336 = vmatpush.xpose.msk.msrb.mxu0 %vm738_vm3, %v1477_v39  ;;  %2357 = vmatpush.xpose.msk.msra.mxu3 %vm970_vm7, %v2312_v57  ;;  %v2436_v57 = vld [vmem:[%s3426_s7 + $0xa] ss:$0 sm:$0xff] }
 0x5b0   : > { %v1515_v42 = vpop.f32.mrf.mxu2  ;;  %2333 = vmatmul.msk.f32.vlgmr.msrb.gmra.mxu2 %vm738_vm3, %v1387_v40  ;;  %2347 = vmatpush.xpose.msk.msra.mxu1 %vm970_vm7, %v2304_v53 }
 0x5b1   : > { %2340 = vmatpush.msk.msra.mxu2 %vm864_vm4, %v1515_v42  ;;  %v2372_v42 = vld [vmem:[%s3424_s5 + $0x38] sm:$0xff] }
 0x5b2   : > { %v1555_v43 = vpop.f32.mrf.mxu0  ;;  %2337 = vmatmul.msk.f32.vlgmr.msrb.gmra.mxu0 %vm738_vm3, %v1389_v41 }
 0x5b3   : > { %2344 = vmatpush.msk.msra.mxu0 %vm864_vm4, %v1555_v43  ;;  %2351 = vmatpush.xpose.msk.msrb.mxu2 %vm970_vm7, %v2309_v58  ;;  %v2370_v43 = vld [vmem:[%s3424_s5 + $0x28] sm:$0xff] }
 0x5b4   : > { %2348 = vmatpush.xpose.msk.msra.mxu1 %vm970_vm7, %v2303_v54  ;;  %2358 = vmatpush.xpose.msk.msra.mxu3 %vm970_vm7, %v2311_v59  ;;  %v2435_v54 = vld [vmem:[%s3426_s7 + $0x9] ss:$0 sm:$0xff] }
 0x5b5   : > { %2361 = vmatpush.xpose.msk.msrb.mxu0 %vm970_vm7, %v2317_v60  ;;  %v2382_v60 = vld [vmem:[%s3425_s6 + $0x78] sm:$0xff] }
 0x5b7   : > { %2352 = vmatpush.xpose.msk.msrb.mxu2 %vm970_vm7, %v2308_v61  ;;  %v2381_v61 = vld [vmem:[%s3425_s6 + $0x70] sm:$0xff] }
 0x5b8   : > { %2349 = vmatpush.xpose.msk.msra.mxu1 %vm970_vm7, %v2302_v56  ;;  %2359 = vmatpush.xpose.msk.msra.mxu3 %vm970_vm7, %v2310_v0  ;;  %v2380_v0 = vld [vmem:[%s3425_s6 + $0x68] sm:$0xff] }
 0x5b9   : > { %2362 = vmatpush.xpose.msk.msrb.mxu0 %vm970_vm7, %v2316_v1  ;;  %v2379_v1 = vld [vmem:[%s3425_s6 + $0x60] sm:$0xff] }
 0x5bb   : > { %2353 = vmatpush.xpose.msk.msrb.mxu2 %vm970_vm7, %v2307_v37  ;;  %v2378_v37 = vld [vmem:[%s3425_s6 + $0x58] sm:$0xff] }
 0x5bd   : > { %2363 = vmatpush.xpose.msk.msrb.mxu0 %vm970_vm7, %v2315_v2  ;;  %v2377_v2 = vld [vmem:[%s3425_s6 + $0x50] sm:$0xff] }
 0x5bf   : > { %2354 = vmatpush.xpose.msk.msrb.mxu2 %vm970_vm7, %v2306_v3  ;;  %v2376_v3 = vld [vmem:[%s3425_s6 + $0x48] sm:$0xff] }
 0x5c1   : > { %2364 = vmatpush.xpose.msk.msrb.mxu0 %vm970_vm7, %v2314_v4  ;;  %v2375_v4 = vld [vmem:[%s3425_s6 + $0x40] sm:$0xff] }
 0x626   : > { %v1581_v46 = vpop.f32.mrf.mxu1 }
 0x627   : > { %2339 = vmatmul.msk.f32.vlgmr.msrb.gmra.mxu1 %vm860_vm5, %v1581_v46  ;;  %v1662_v47 = vsel %vm843_vm6, %v1581_v46, 0.0 }
 0x628   : > { %1663 = vadd.xlane.f32.xlu2 %v1662_v47  ;;  %1988 = vmatpush.msrb.mxu1 %v2372_v42 }
 0x62b   : > { %v1633_v62 = vpop.f32.mrf.mxu3 }
 0x62c   : > { %2343 = vmatmul.msk.f32.vlgmr.msrb.gmra.mxu3 %vm860_vm5, %v1633_v62  ;;  %v1668_v48 = vsel %vm843_vm6, %v1633_v62, 0.0 }
 0x62d   : > { %1669 = vadd.xlane.f32.xlu1 %v1668_v48 }
 0x62f   : > { %v1659_v49 = vpop.f32.mrf.mxu0 }
 0x630   : > { %2345 = vmatmul.msk.f32.vlgmr.msra.gmra.mxu0 %vm860_vm5, %v1659_v49  ;;  %v1671_v52 = vsel %vm843_vm6, %v1659_v49, 0.0 }
 0x633   : > { %v1607_v50 = vpop.f32.mrf.mxu2 }
 0x634   : > { %2341 = vmatmul.msk.f32.vlgmr.msra.gmra.mxu2 %vm860_vm5, %v1607_v50  ;;  %v1665_v51 = vsel %vm843_vm6, %v1607_v50, 0.0 }
 0x635   : > { %1666 = vadd.xlane.f32.xlu0 %v1665_v51  ;;  %2025 = vmatpush.msra.mxu2 %v2382_v60 }
 0x637   : > { %2026 = vmatpush.msra.mxu2 %v2381_v61 }
 0x639   : > { %2027 = vmatpush.msra.mxu2 %v2380_v0 }
 0x63b   : > { %2028 = vmatpush.msra.mxu2 %v2379_v1 }
 0x63d   : > { %1672 = vadd.xlane.f32.xlu0 %v1671_v52  ;;  %2029 = vmatpush.msra.mxu2 %v2378_v37 }
 0x63f   : > { %2030 = vmatpush.msra.mxu2 %v2377_v2 }
 0x641   : > { %2031 = vmatpush.msra.mxu2 %v2376_v3 }
 0x643   : > { %2032 = vmatpush.msra.mxu2 %v2375_v4 }
 0x69b   : > { %v1664_v5 = vpop.xlane.xlu2 %1663 }
 0x69c   : > { %2453 = vrcp.f32 %v1664_v5  ;;  %v2437_v5 = vld [vmem:[%s3426_s7 + $0xb] ss:$0 sm:$0xff] }
 0x6a0   : > { %v1670_v9 = vpop.xlane.xlu1 %1669 }
 0x6a1   : > { %2455 = vrcp.f32 %v1670_v9 }
 0x6a2   : > { %v2454_v6 = vpop.eup %2453 }
 0x6a4   : > { %v1701_v7 = vpop.f32.mrf.mxu1 }
 0x6a5   : > { %v1782_v8 = vmul.f32 %v2454_v6, %v1701_v7 }
 0x6a7   : > { %2350 = vmatmul.msk.f32.vlgmr.msra.gmra.mxu1 %vm970_vm7, %v1782_v8  ;;  %v2456_v11 = vpop.eup %2455 }
 0x6a8   : > { %v1667_v10 = vpop.xlane.xlu0 %1666 }
 0x6a9   : > { %2457 = vrcp.f32 %v1667_v10 }
 0x6ad   : > { %v1779_v17 = vpop.f32.mrf.mxu0 }
 0x6af   : > { %v1753_v12 = vpop.f32.mrf.mxu3  ;;  %v2458_v15 = vpop.eup %2457 }
 0x6b0   : > { %v1784_v13 = vmul.f32 %v2456_v11, %v1753_v12  ;;  %v1673_v14 = vpop.xlane.xlu0 %1672 }
 0x6b1   : > { %2459 = vrcp.f32 %v1673_v14 }
 0x6b2   : > { %2360 = vmatmul.msk.f32.vlgmr.msra.gmra.mxu3 %vm970_vm7, %v1784_v13 }
 0x6b7   : > { %v2460_v16 = vpop.eup %2459  ;;  %v1727_v18 = vpop.f32.mrf.mxu2 }
 0x6b8   : > { %v1785_v19 = vmul.f32 %v2460_v16, %v1779_v17  ;;  %v1783_v20 = vmul.f32 %v2458_v15, %v1727_v18  ;;  %v2438_v17 = vld [vmem:[%s3426_s7 + $0xc] ss:$0 sm:$0xff] }
 0x6ba   : > { %2355 = vmatmul.msk.f32.vlgmr.msrb.gmra.mxu2 %vm970_vm7, %v1783_v20  ;;  %2365 = vmatmul.msk.f32.vlgmr.msrb.gmra.mxu0 %vm970_vm7, %v1785_v19 }
 0x724   : > { %v1818_v21 = vpop.f32.mrf.mxu1 }
 0x725   : > { %v1926_v24 = vsel %vm1111_vm8, %v1818_v21, 0.0 }
 0x735   : > { %v1888_v22 = vpop.f32.mrf.mxu3 }
 0x736   : > { %v1929_v28 = vsel %vm1111_vm8, %v1888_v22, 0.0 }
 0x737   : > { %v1923_v26 = vpop.f32.mrf.mxu0 }
 0x738   : > { %v1931_v30 = vsel %vm1111_vm8, %v1923_v26, 0.0 }
 0x73d   : > { %v1853_v23 = vpop.f32.mrf.mxu2 }
 0x73e   : > { %v1927_v25 = vsel %vm1111_vm8, %v1853_v23, 0.0 }
 0x73f   : > { %v1928_v27 = vadd.f32 %v1927_v25, %v1926_v24 }
 0x741   : > { %v1930_v29 = vadd.f32 %v1929_v28, %v1928_v27  ;;  %v2071_v27 = vld [vmem:[%s3427_s8 + $0x18] sm:$0xff]  ;;  %v2070_v28 = vld [vmem:[%s3427_s8 + $0x10] sm:$0xff] }
 0x742   : > { %2088 = vmatpush.msrb.mxu3 %v2071_v27 }
 0x743   : > { %v1932_v31 = vadd.f32 %v1931_v30, %v1930_v29  ;;  %v2069_v29 = vld [vmem:[%s3427_s8 + $0x8] sm:$0xff]  ;;  %v2068_v30 = vld [vmem:[%s3427_s8] sm:$0xff] }
 0x744   : > { %2089 = vmatpush.msrb.mxu3 %v2070_v28 }
 0x745   : > { %v1933_v33 = vadd.f32 %v1932_v31, %v3134_v63  ;;  %v2371_v63 = vld [vmem:[%s3424_s5 + $0x30] sm:$0xff] }
 0x746   : > { %1989 = vmatpush.msrb.mxu1 %v2371_v63  ;;  %2090 = vmatpush.msrb.mxu3 %v2069_v29 }
 0x747   : > { %v3304_v34 = vadd.f32 %v2434_v32, %v1933_v33 }
 0x748   : > { %1990 = vmatpush.msrb.mxu1 %v2370_v43  ;;  %2091 = vmatpush.msrb.mxu3 %v2068_v30 }
 0x749   : > { %v1940_v35 = vsel %vm1111_vm8, %v3304_v34, 0.0 }
 0x74a   : > { %1941 = vadd.xlane.f32.xlu1 %v1940_v35  ;;  %1991 = vmatpush.msrb.mxu1 %v2369_v44 }
 0x7bd   : > { %v1942_v36 = vpop.xlane.xlu1 %1941 }
 0x7be   : > { %v1943_v38 = vmul.f32 %v1942_v36, %v2981_v45 }
 0x7c0   : > { %v1944_v39 = vsub.f32 %v3304_v34, %v1943_v38 }
 0x7c2   : > { %v1945_v40 = vmul.f32 %v1944_v39, %v1944_v39 }
 0x7c4   : > { %v1946_v41 = vsel %vm1111_vm8, %v1945_v40, 0.0 }
 0x7c5   : > { %1947 = vadd.xlane.f32.xlu2 %v1946_v41  ;;  %v2041_v41 = vld [vmem:[%s3427_s8 + $0x20] sm:$0x1] }
 0x838   : > { %v1948_v46 = vpop.xlane.xlu2 %1947 }
 0x839   : > { %v1949_v47 = vmul.f32 %v1948_v46, %v2981_v45  ;;  %v2072_v46 = vld [vmem:[%s3427_s8 + $0x22] sm:$0x1] }
 0x83b   : > { %v1950_v62 = vadd.f32 1e-05, %v1949_v47 }
 0x83d   : > { %2461 = vrsqrt.f32 %v1950_v62  ;;  %vm1957_vm14 = vweird.f32 %v1950_v62 }
 0x843   : > { %v2462_v48 = vpop.eup %2461 }
 0x844   : > { %v1952_v49 = vmul.f32 %v2462_v48, %v1950_v62  ;;  %vm1958_vm13 = vweird.f32 %v2462_v48 }
 0x845   : > { %vm1959_vm15 = vmor %vm1957_vm14, %vm1958_vm13 }
 0x846   : > { %v1953_v50 = vmul.f32 %v2462_v48, %v1952_v49 }
 0x848   : > { %v1954_v51 = vmul.f32 0.5, %v1953_v50 }
 0x84a   : > { %v1955_v52 = vsub.f32 1.5, %v1954_v51 }
 0x84c   : > { %v1956_v53 = vmul.f32 %v2462_v48, %v1955_v52 }
 0x84e   : > { %v1960_v55 = vsel %vm1959_vm15, %v2462_v48, %v1956_v53 }
 0x84f   : > { %v1961_v56 = vmul.f32 %v1960_v55, %v1944_v39 }
 0x851   : > { %v1963_v58 = vmul.f32 %v2435_v54, %v1961_v56 }
 0x853   : > { %v1965_v59 = vadd.f32 %v2436_v57, %v1963_v58 }
 0x855   : > { %2374 = vmatmul.msk.f32.vlgmr.msrb.gmra.mxu1 %vm478_vm2, %v1965_v59 }
 0x8d2   : > { %v1993_v6 = vpop.f32.mrf.mxu1 }
 0x8d3   : > { %v1994_v7 = vadd.f32 %v2437_v5, %v1993_v6 }
 0x8d5   : > { %v1997_v8 = vmul.f32 0.044715, %v1994_v7  ;;  %v1996_v14 = vmul.f32 0.5, %v1994_v7 }
 0x8d7   : > { %v1998_v9 = vmul.f32 %v1997_v8, %v1994_v7 }
 0x8d9   : > { %v1999_v10 = vmul.f32 %v1998_v9, %v1994_v7 }
 0x8db   : > { %v2000_v11 = vadd.f32 %v1999_v10, %v1994_v7 }
 0x8dd   : > { %v2001_v12 = vmul.f32 0.7978846, %v2000_v11 }
 0x8df   : > { %2463 = vtanh.f32 %v2001_v12 }
 0x8e5   : > { %v2464_v13 = vpop.eup %2463 }
 0x8e6   : > { %v2003_v15 = vadd.f32 1.0, %v2464_v13 }
 0x8e8   : > { %v2004_v16 = vmul.f32 %v2003_v15, %v1996_v14 }
 0x8ea   : > { %2383 = vmatmul.msk.f32.vlgmr.msra.gmra.mxu2 %vm364_vm0, %v2004_v16 }
 0x96d   : > { %v2034_v18 = vpop.f32.mrf.mxu2 }
 0x96e   : > { %v2037_v19 = vadd.f32 %v2034_v18, %v3304_v34 }
 0x970   : > { %v2040_v20 = vadd.f32 %v2438_v17, %v2037_v19 }
 0x972   : > { %v2044_v21 = vsel %vm2043_vm1, %v2040_v20, 0.0 }
 0x973   : > { %2045 = vadd.xlane.f32.xlu0 %v2044_v21 }
 0x9e6   : > { %v2046_v22 = vpop.xlane.xlu0 %2045 }
 0x9e7   : > { %v2047_v23 = vmul.f32 %v2046_v22, %v2981_v45 }
 0x9e9   : > { %v2048_v24 = vsub.f32 %v2040_v20, %v2047_v23 }
 0x9eb   : > { %v2049_v25 = vmul.f32 %v2048_v24, %v2048_v24 }
 0x9ed   : > { %v2050_v26 = vsel %vm2043_vm1, %v2049_v25, 0.0 }
 0x9ee   : > { %2051 = vadd.xlane.f32.xlu1 %v2050_v26 }
 0xa61   : > { %v2052_v31 = vpop.xlane.xlu1 %2051 }
 0xa62   : > { %v2053_v32 = vmul.f32 %v2052_v31, %v2981_v45  ;;  %v2042_v45 = vld [vmem:[%s3427_s8 + $0x21] sm:$0x1] }
 0xa64   : > { %v2054_v33 = vadd.f32 1e-05, %v2053_v32 }
 0xa66   : > { %2465 = vrsqrt.f32 %v2054_v33  ;;  %vm2061_vm3 = vweird.f32 %v2054_v33 }
 0xa6c   : > { %v2466_v34 = vpop.eup %2465 }
 0xa6d   : > { %v2056_v35 = vmul.f32 %v2466_v34, %v2054_v33  ;;  %vm2062_vm0 = vweird.f32 %v2466_v34 }
 0xa6e   : > { %vm2063_vm4 = vmor %vm2061_vm3, %vm2062_vm0 }
 0xa6f   : > { %v2057_v36 = vmul.f32 %v2466_v34, %v2056_v35 }
 0xa71   : > { %v2058_v38 = vmul.f32 0.5, %v2057_v36 }
 0xa73   : > { %v2059_v39 = vsub.f32 1.5, %v2058_v38 }
 0xa75   : > { %v2060_v40 = vmul.f32 %v2466_v34, %v2059_v39 }
 0xa77   : > { %v2064_v42 = vsel %vm2063_vm4, %v2466_v34, %v2060_v40 }
 0xa78   : > { %v2065_v63 = vmul.f32 %v2064_v42, %v2048_v24 }
 0xa7a   : > { %v2066_v43 = vmul.f32 %v2065_v63, %v2041_v41 }
 0xa7c   : > { %v2067_v44 = vadd.f32 %v2066_v43, %v2042_v45 }
 0xa7e   : > { %2385 = vmatmul.msk.f32.vlgmr.msrb.gmra.mxu3 %vm478_vm2, %v2067_v44 }
 0xb01   : > { %v2093_v47 = vpop.f32.mrf.mxu3 }
 0xb02   : > { %v2094_v62 = vadd.f32 %v2093_v47, %v2072_v46 }
 0xb04   : > { %2096 = vst [vmem:[%s324_s29] sm:$0x1] %v2094_v62 }
 0xb05   : > { %2494 = shalt.err (!%p2491_p3)
}
 0xb06   : > { %2389 = dma.vmem_to_hbm [thread:$0]  (%p2620_p5), %s2109_s14, 16, %s2111_s16, %s2098_s27  }
 0xb07 PF: > { %p2395_p4 = scmp.ge.s32.totalorder %s2529_s12, 2  ;;  %s2122_s22 = sand.u32 1, %s2517_s30  }
 0xb08   : > { %s2123_s25 = scalar_lea.sflag [#allocation3], %s2122_s22 }
 0xb09   : > { %p2392_p7 = pnand %p2395_p4, %p2624_p6 }
 0xb0b   : > { %p2393_p8 = pneg %p2392_p7 }
 0xb0d   : > { %2512 = dma.done.wait (%p2393_p8), %s2123_s25, 16  }
 0xb0e   : > { %2514 = vsyncadd (%p2393_p8), %s2123_s25, 4294967280  ;;  %s3432_s28 = sld [smem:[#allocation5_spill]]  ;;  %p19_p9 = scmp.ge.s32.totalorder %s2607_s15, 4  }
 0xb0f   : > { %s3433_s30 = smov %s2521_s10  ;;  %s3434_s10 = smov %s2525_s11 }
 0xb10   : > { %s3436_s12 = smov %s2607_s15  ;;  %21 = sbr.rel (!%p19_p9) target bundleno = 3 (0x3), region = 100 }
 0xb14   : > { %s3435_s11 = smov %s3432_s28 }
 0xb15   :  { %2128 = vsyncpa [#allocation3], 1 }
 0xb16   :  { %2130 = vsyncpa [#allocation3 + $0x1], 1 }

</bundles_post_ra>
